<compile_context>
chip_gen: v7x
topology: tpu7x:2x2x1
jax: 0.10.0
libtpu: 0.0.40
codegen_flags: <defaults>
</compile_context>

<pallas_src>
import jax
import jax.numpy as jnp
from jax.experimental import pallas as pl
from jax.experimental.pallas import tpu as pltpu


def bottleneck_kernel(x_ref, w1_ref, b1_ref, w2_ref, b2_ref, w3_ref, b3_ref,
                      o_ref):
    x = x_ref[...]                                  # (TM, C) f32, kept for residual
    xb = x.astype(jnp.bfloat16)

    # conv1 (1x1, BN folded into weights) + relu
    h = jnp.dot(xb, w1_ref[...], preferred_element_type=jnp.float32)
    h = jnp.maximum(h + b1_ref[...], 0.0)

    # conv2 (1x1, stride 1, BN folded) + relu
    h = jnp.dot(h.astype(jnp.bfloat16), w2_ref[...],
                preferred_element_type=jnp.float32)
    h = jnp.maximum(h + b2_ref[...], 0.0)

    # conv3 (1x1, BN folded)
    h = jnp.dot(h.astype(jnp.bfloat16), w3_ref[...],
                preferred_element_type=jnp.float32)
    h = h + b3_ref[...]

    # identity residual (downsample=None) + final relu, all in f32
    o_ref[...] = jnp.maximum(h + x, 0.0)


def _round_up(v, m):
    return ((v + m - 1) // m) * m


def _pick_tile_m(m, requested):
    t = min(requested, m)
    t -= t % 8
    while t > 8 and m % t != 0:
        t -= 8
    if t < 8 or m % t != 0:
        raise ValueError(f"M={m} must be a multiple of 8")
    return t


def fold_bn(gamma, beta, mean, var, eps=1e-5):
    scale = gamma / jnp.sqrt(var + eps)
    bias = beta - mean * scale
    return scale, bias


def fold_and_pad_params(params):
    """Fold BN scale into conv weights, zero-pad channel dims to >=128 lanes,
    cast matmul weights to bf16.  Returns (packed, cin, cpad, ppad)."""
    w1, s1, b1, w2, s2, b2, w3, s3, b3 = params
    s1, b1 = s1.reshape(-1), b1.reshape(-1)
    s2, b2 = s2.reshape(-1), b2.reshape(-1)
    s3, b3 = s3.reshape(-1), b3.reshape(-1)

    cin, p = w1.shape
    cout = w3.shape[1]
    assert cout == cin, "identity residual requires inplanes == planes * 4"

    # Fold the BN scale into the conv weights (per output channel).
    w1f = w1 * s1[None, :]
    w2f = w2 * s2[None, :]
    w3f = w3 * s3[None, :]

    cpad = max(128, _round_up(cin, 128))
    ppad = max(128, _round_up(p, 128))

    w1p = jnp.zeros((cpad, ppad), jnp.float32).at[:cin, :p].set(w1f)
    w2p = jnp.zeros((ppad, ppad), jnp.float32).at[:p, :p].set(w2f)
    w3p = jnp.zeros((ppad, cpad), jnp.float32).at[:p, :cout].set(w3f)
    b1p = jnp.zeros((1, ppad), jnp.float32).at[0, :p].set(b1)
    b2p = jnp.zeros((1, ppad), jnp.float32).at[0, :p].set(b2)
    b3p = jnp.zeros((1, cpad), jnp.float32).at[0, :cout].set(b3)

    packed = (w1p.astype(jnp.bfloat16), b1p,
              w2p.astype(jnp.bfloat16), b2p,
              w3p.astype(jnp.bfloat16), b3p)
    return packed, cin, cpad, ppad


def bottleneck_forward_2d(x2d, params, *, tile_m=512):
    """Core path: x2d is (M, Cin) float32 (flattened NHWC rows); returns (M, Cin)."""
    packed, cin, cpad, ppad = fold_and_pad_params(params)
    w1, b1, w2, b2, w3, b3 = packed

    m = x2d.shape[0]
    assert x2d.shape[1] == cin
    if cpad != cin:
        x2d = jnp.pad(x2d, ((0, 0), (0, cpad - cin)))

    tm = _pick_tile_m(m, tile_m)
    grid = (m // tm,)

    row_spec = pl.BlockSpec((tm, cpad), lambda i: (i, 0))
    # Weights / biases are resident: their block index is constant across the
    # grid, so Pallas fetches them once.
    # TODO(synk): on v7x (64 MiB VMEM) single-buffer them via
    #             pipeline_mode=pl.Buffered(1) to halve their VMEM footprint.
    full = lambda shape: pl.BlockSpec(shape, lambda i: (0, 0))

    weight_bytes = (cpad * ppad + ppad * ppad + ppad * cpad) * 2   # bf16
    bias_bytes = (2 * ppad + cpad) * 4
    act_bytes = m * cpad * 4
    flops = 2 * m * (cpad * ppad + ppad * ppad + ppad * cpad)

    # VMEM budget: double-buffered x/out tiles + (double-buffered) weights + headroom.
    vmem_bytes = 2 * (2 * tm * cpad * 4) + 2 * (weight_bytes + bias_bytes)
    vmem_bytes = int(1.5 * vmem_bytes) + (4 << 20)
    vmem_bytes = max(16 << 20, min(vmem_bytes, 64 << 20))

    out = pl.pallas_call(
        bottleneck_kernel,
        out_shape=jax.ShapeDtypeStruct((m, cpad), jnp.float32),
        grid_spec=pltpu.PrefetchScalarGridSpec(
            num_scalar_prefetch=0,
            grid=grid,
            in_specs=[
                row_spec,                      # x (f32, also the residual)
                full((cpad, ppad)),            # w1 (bf16, BN-folded)
                full((1, ppad)),               # b1
                full((ppad, ppad)),            # w2
                full((1, ppad)),               # b2
                full((ppad, cpad)),            # w3
                full((1, cpad)),               # b3
            ],
            out_specs=row_spec,
        ),
        compiler_params=pltpu.CompilerParams(
            dimension_semantics=("parallel",),
            vmem_limit_bytes=vmem_bytes),
        cost_estimate=pl.CostEstimate(
            flops=flops,
            transcendentals=0,
            bytes_accessed=2 * act_bytes + weight_bytes + bias_bytes),
    )(x2d, w1, b1, w2, b2, w3, b3)

    if cpad != cin:
        out = out[:, :cin]
    return out


def bottleneck_forward_nhwc(x_nhwc, params, *, tile_m=512):
    n, h, w, c = x_nhwc.shape
    out = bottleneck_forward_2d(x_nhwc.reshape(n * h * w, c), params,
                                tile_m=tile_m)
    return out.reshape(n, h, w, c)


def bottleneck_forward_nchw(x_nchw, params, *, tile_m=512):
    # Compatibility adapter for the PyTorch NCHW interface.  In an end-to-end
    # NHWC network call bottleneck_forward_nhwc / _2d directly and skip these
    # transposes (each is a full extra HBM read+write of the tensor).
    out = bottleneck_forward_nhwc(jnp.transpose(x_nchw, (0, 2, 3, 1)), params,
                                  tile_m=tile_m)
    return jnp.transpose(out, (0, 3, 1, 2))


def make_params(key, inplanes, planes):
    """Deterministic synthetic weights matching the PyTorch module's shapes."""
    ks = jax.random.split(key, 12)
    cout = planes * 4
    # Conv weights: torch layout (Cout, Cin, 1, 1) -> stored here as (Cin, Cout).
    w1 = jax.random.normal(ks[0], (inplanes, planes), jnp.float32) * 0.1
    w2 = jax.random.normal(ks[1], (planes, planes), jnp.float32) * 0.1
    w3 = jax.random.normal(ks[2], (planes, cout), jnp.float32) * 0.1
    # BatchNorm params / running stats (inference mode), folded to scale/bias.
    s1, b1 = fold_bn(jax.random.normal(ks[3], (planes,)) * 0.1 + 1.0,
                     jax.random.normal(ks[4], (planes,)) * 0.1,
                     jax.random.normal(ks[5], (planes,)) * 0.1,
                     jax.random.uniform(ks[6], (planes,), minval=0.5, maxval=1.5))
    s2, b2 = fold_bn(jax.random.normal(ks[7], (planes,)) * 0.1 + 1.0,
                     jax.random.normal(ks[8], (planes,)) * 0.1,
                     jnp.zeros((planes,)), jnp.ones((planes,)))
    s3, b3 = fold_bn(jax.random.normal(ks[9], (cout,)) * 0.1 + 1.0,
                     jax.random.normal(ks[10], (cout,)) * 0.1,
                     jnp.zeros((cout,)), jnp.ones((cout,)))
    return (w1, s1, b1, w2, s2, b2, w3, s3, b3)


def bottleneck_reference_f32(x_nchw, params):
    """Exact module math (inference-mode BN), all f32, NCHW in/out."""
    w1, s1, b1, w2, s2, b2, w3, s3, b3 = params
    n, c, hh, ww = x_nchw.shape
    x2d = jnp.transpose(x_nchw, (0, 2, 3, 1)).reshape(-1, c)
    h1 = jnp.maximum((x2d @ w1) * s1.reshape(1, -1) + b1.reshape(1, -1), 0.0)
    h2 = jnp.maximum((h1 @ w2) * s2.reshape(1, -1) + b2.reshape(1, -1), 0.0)
    h3 = (h2 @ w3) * s3.reshape(1, -1) + b3.reshape(1, -1)
    o = jnp.maximum(h3 + x2d, 0.0)
    return jnp.transpose(o.reshape(n, hh, ww, -1), (0, 3, 1, 2))


def bottleneck_reference_bf16(x_nchw, params):
    """Same folding / bf16 casting as the kernel (f32 accumulation and tail)."""
    w1, s1, b1, w2, s2, b2, w3, s3, b3 = params
    n, c, hh, ww = x_nchw.shape
    bf = jnp.bfloat16
    x2d = jnp.transpose(x_nchw, (0, 2, 3, 1)).reshape(-1, c)
    w1f = (w1 * s1.reshape(1, -1)).astype(bf)
    w2f = (w2 * s2.reshape(1, -1)).astype(bf)
    w3f = (w3 * s3.reshape(1, -1)).astype(bf)
    h1 = jnp.maximum(jnp.dot(x2d.astype(bf), w1f,
                             preferred_element_type=jnp.float32)
                     + b1.reshape(1, -1), 0.0)
    h2 = jnp.maximum(jnp.dot(h1.astype(bf), w2f,
                             preferred_element_type=jnp.float32)
                     + b2.reshape(1, -1), 0.0)
    h3 = jnp.dot(h2.astype(bf), w3f,
                 preferred_element_type=jnp.float32) + b3.reshape(1, -1)
    o = jnp.maximum(h3 + x2d, 0.0)
    return jnp.transpose(o.reshape(n, hh, ww, -1), (0, 3, 1, 2))


if __name__ == "__main__":
    # Small but lane-aligned shapes: inplanes = planes * expansion = 128
    # channels; 4 x 32 x 32 spatial rows -> M = 4096 = 8 grid steps of 512.
    planes = 32
    inplanes = planes * 4          # 128
    N, H, W = 4, 32, 32

    key = jax.random.PRNGKey(0)
    kx, kp = jax.random.split(key)
    x = jax.random.normal(kx, (N, inplanes, H, W), jnp.float32)
    params = make_params(kp, inplanes, planes)

    out = bottleneck_forward_nchw(x, params, tile_m=512)
    out = jax.block_until_ready(out)
    assert out.shape == (N, inplanes, H, W)

    ref_bf16 = bottleneck_reference_bf16(x, params)
    ref_f32 = bottleneck_reference_f32(x, params)
    assert jnp.allclose(out, ref_bf16, atol=2e-3, rtol=2e-3), \
        "mismatch vs bf16-matched reference"
    assert jnp.allclose(out, ref_f32, atol=5e-2, rtol=5e-2), \
        "mismatch vs f32 module reference"

    print("KERNEL_OK")
</pallas_src>

<mosaic_0001>
module attributes {stable_mosaic.version = 11 : i64} {
  func.func @bottleneck_kernel(%arg0: i32, %arg1: memref<512x128xf32, #tpu.memory_space<vmem>>, %arg2: memref<128x128xbf16, #tpu.memory_space<vmem>>, %arg3: memref<1x128xf32, #tpu.memory_space<vmem>>, %arg4: memref<128x128xbf16, #tpu.memory_space<vmem>>, %arg5: memref<1x128xf32, #tpu.memory_space<vmem>>, %arg6: memref<128x128xbf16, #tpu.memory_space<vmem>>, %arg7: memref<1x128xf32, #tpu.memory_space<vmem>>, %arg8: memref<512x128xf32, #tpu.memory_space<vmem>>) attributes {dimension_semantics = [#tpu.dimension_semantics<parallel>], iteration_bounds = array<i64: 8>, scalar_prefetch = 0 : i64, scratch_operands = 0 : i64, tpu.core_type = #tpu.core_type<tc>, window_params = [{transform_indices = @transform_0, window_bounds = array<i64: 512, 128>}, {pipeline_mode = #tpu.pipeline_mode<synchronous>, transform_indices = @transform_1, window_bounds = array<i64: 128, 128>}, {pipeline_mode = #tpu.pipeline_mode<synchronous>, transform_indices = @transform_2, window_bounds = array<i64: 1, 128>}, {pipeline_mode = #tpu.pipeline_mode<synchronous>, transform_indices = @transform_3, window_bounds = array<i64: 128, 128>}, {pipeline_mode = #tpu.pipeline_mode<synchronous>, transform_indices = @transform_4, window_bounds = array<i64: 1, 128>}, {pipeline_mode = #tpu.pipeline_mode<synchronous>, transform_indices = @transform_5, window_bounds = array<i64: 128, 128>}, {pipeline_mode = #tpu.pipeline_mode<synchronous>, transform_indices = @transform_6, window_bounds = array<i64: 1, 128>}, {transform_indices = @transform_7, window_bounds = array<i64: 512, 128>}]} {
    %c0 = arith.constant 0 : index
    %c0_0 = arith.constant 0 : index
    %0 = vector.load %arg1[%c0, %c0_0] : memref<512x128xf32, #tpu.memory_space<vmem>>, vector<512x128xf32>
    %1 = arith.truncf %0 : vector<512x128xf32> to vector<512x128xbf16>
    %c0_1 = arith.constant 0 : index
    %c0_2 = arith.constant 0 : index
    %2 = vector.load %arg2[%c0_1, %c0_2] : memref<128x128xbf16, #tpu.memory_space<vmem>>, vector<128x128xbf16>
    %cst = arith.constant dense<0.000000e+00> : vector<512x128xf32>
    %3 = tpu.matmul %1, %2, %cst {dimension_numbers = #tpu.dot_dimension_numbers<[1], [0], [0], [1], [0, 0, 1, 1], [], []>} : vector<512x128xbf16>, vector<128x128xbf16>, vector<512x128xf32> -> vector<512x128xf32>
    %c0_3 = arith.constant 0 : index
    %c0_4 = arith.constant 0 : index
    %4 = vector.load %arg3[%c0_3, %c0_4] : memref<1x128xf32, #tpu.memory_space<vmem>>, vector<1x128xf32>
    %5 = vector.broadcast %4 : vector<1x128xf32> to vector<512x128xf32>
    %6 = arith.addf %3, %5 : vector<512x128xf32>
    %cst_5 = arith.constant 0.000000e+00 : f32
    %7 = vector.broadcast %cst_5 : f32 to vector<512x128xf32>
    %8 = arith.maximumf %6, %7 : vector<512x128xf32>
    %9 = arith.truncf %8 : vector<512x128xf32> to vector<512x128xbf16>
    %c0_6 = arith.constant 0 : index
    %c0_7 = arith.constant 0 : index
    %10 = vector.load %arg4[%c0_6, %c0_7] : memref<128x128xbf16, #tpu.memory_space<vmem>>, vector<128x128xbf16>
    %cst_8 = arith.constant dense<0.000000e+00> : vector<512x128xf32>
    %11 = tpu.matmul %9, %10, %cst_8 {dimension_numbers = #tpu.dot_dimension_numbers<[1], [0], [0], [1], [0, 0, 1, 1], [], []>} : vector<512x128xbf16>, vector<128x128xbf16>, vector<512x128xf32> -> vector<512x128xf32>
    %c0_9 = arith.constant 0 : index
    %c0_10 = arith.constant 0 : index
    %12 = vector.load %arg5[%c0_9, %c0_10] : memref<1x128xf32, #tpu.memory_space<vmem>>, vector<1x128xf32>
    %13 = vector.broadcast %12 : vector<1x128xf32> to vector<512x128xf32>
    %14 = arith.addf %11, %13 : vector<512x128xf32>
    %cst_11 = arith.constant 0.000000e+00 : f32
    %15 = vector.broadcast %cst_11 : f32 to vector<512x128xf32>
    %16 = arith.maximumf %14, %15 : vector<512x128xf32>
    %17 = arith.truncf %16 : vector<512x128xf32> to vector<512x128xbf16>
    %c0_12 = arith.constant 0 : index
    %c0_13 = arith.constant 0 : index
    %18 = vector.load %arg6[%c0_12, %c0_13] : memref<128x128xbf16, #tpu.memory_space<vmem>>, vector<128x128xbf16>
    %cst_14 = arith.constant dense<0.000000e+00> : vector<512x128xf32>
    %19 = tpu.matmul %17, %18, %cst_14 {dimension_numbers = #tpu.dot_dimension_numbers<[1], [0], [0], [1], [0, 0, 1, 1], [], []>} : vector<512x128xbf16>, vector<128x128xbf16>, vector<512x128xf32> -> vector<512x128xf32>
    %c0_15 = arith.constant 0 : index
    %c0_16 = arith.constant 0 : index
    %20 = vector.load %arg7[%c0_15, %c0_16] : memref<1x128xf32, #tpu.memory_space<vmem>>, vector<1x128xf32>
    %21 = vector.broadcast %20 : vector<1x128xf32> to vector<512x128xf32>
    %22 = arith.addf %19, %21 : vector<512x128xf32>
    %23 = arith.addf %22, %0 : vector<512x128xf32>
    %cst_17 = arith.constant 0.000000e+00 : f32
    %24 = vector.broadcast %cst_17 : f32 to vector<512x128xf32>
    %25 = arith.maximumf %23, %24 : vector<512x128xf32>
    %c0_18 = arith.constant 0 : index
    %c0_19 = arith.constant 0 : index
    %26 = vector.load %arg8[%c0_18, %c0_19] : memref<512x128xf32, #tpu.memory_space<vmem>>, vector<512x128xf32>
    tpu.vector_store %arg8[%c0_18, %c0_19], %25 {strides = array<i32>} : memref<512x128xf32, #tpu.memory_space<vmem>>, vector<512x128xf32>,
    return
  }
  func.func @transform_0(%arg0: i32) -> (i32, i32) {
    %c0_i32 = arith.constant 0 : i32
    %c0_i32_0 = arith.constant 0 : i32
    return %arg0, %c0_i32 : i32, i32
  }
  func.func @transform_1(%arg0: i32) -> (i32, i32) {
    %c0_i32 = arith.constant 0 : i32
    %c0_i32_0 = arith.constant 0 : i32
    %c0_i32_1 = arith.constant 0 : i32
    return %c0_i32, %c0_i32_0 : i32, i32
  }
  func.func @transform_2(%arg0: i32) -> (i32, i32) {
    %c0_i32 = arith.constant 0 : i32
    %c0_i32_0 = arith.constant 0 : i32
    %c0_i32_1 = arith.constant 0 : i32
    return %c0_i32, %c0_i32_0 : i32, i32
  }
  func.func @transform_3(%arg0: i32) -> (i32, i32) {
    %c0_i32 = arith.constant 0 : i32
    %c0_i32_0 = arith.constant 0 : i32
    %c0_i32_1 = arith.constant 0 : i32
    return %c0_i32, %c0_i32_0 : i32, i32
  }
  func.func @transform_4(%arg0: i32) -> (i32, i32) {
    %c0_i32 = arith.constant 0 : i32
    %c0_i32_0 = arith.constant 0 : i32
    %c0_i32_1 = arith.constant 0 : i32
    return %c0_i32, %c0_i32_0 : i32, i32
  }
  func.func @transform_5(%arg0: i32) -> (i32, i32) {
    %c0_i32 = arith.constant 0 : i32
    %c0_i32_0 = arith.constant 0 : i32
    %c0_i32_1 = arith.constant 0 : i32
    return %c0_i32, %c0_i32_0 : i32, i32
  }
  func.func @transform_6(%arg0: i32) -> (i32, i32) {
    %c0_i32 = arith.constant 0 : i32
    %c0_i32_0 = arith.constant 0 : i32
    %c0_i32_1 = arith.constant 0 : i32
    return %c0_i32, %c0_i32_0 : i32, i32
  }
  func.func @transform_7(%arg0: i32) -> (i32, i32) {
    %c0_i32 = arith.constant 0 : i32
    %c0_i32_0 = arith.constant 0 : i32
    return %arg0, %c0_i32 : i32, i32
  }
}

</mosaic_0001>

<bundles_post_ra>
// kernel: tpu_custom_call.1
= control target key start
LH: loop header
LB: loop body
LE: loop exit
PB: predicated region body
PF: predicated region fallthrough
CT: control target
= control target key end

     0   :  { %12 = vsyncpa [#allocation3], 0  ;;  %s3816_s0 = inlined_call_operand.hbm [shape: f32[4096,128], index: 0, kind: input, shape index: {}]   ;;  %s3817_s1 = inlined_call_operand.hbm [shape: bf16[128,128], index: 1, kind: input, shape index: {}]   ;;  %s3818_s2 = inlined_call_operand.hbm [shape: f32[1,128], index: 2, kind: input, shape index: {}]   ;;  %s3819_s3 = inlined_call_operand.hbm [shape: bf16[128,128], index: 3, kind: input, shape index: {}]   ;;  %s3820_s4 = inlined_call_operand.hbm [shape: f32[1,128], index: 4, kind: input, shape index: {}]   ;;  %s3821_s5 = inlined_call_operand.hbm [shape: bf16[128,128], index: 5, kind: input, shape index: {}]   ;;  %s3822_s6 = inlined_call_operand.hbm [shape: f32[1,128], index: 6, kind: input, shape index: {}]   ;;  %s3823_s7 = inlined_call_operand.hbm [shape: f32[4096,128], index: 7, kind: output, shape index: {}]  }
   0x1   :  { %14 = vsyncpa [#allocation3 + $0x1], 0 }
   0x2   :  { %15 = vsyncpa [#allocation6], 0 }
   0x3   :  { %16 = vsyncpa [#allocation9], 0 }
   0x4   :  { %17 = vsyncpa [#allocation12], 0 }
   0x5   :  { %18 = vsyncpa [#allocation4], 0 }
   0x6   :  { %20 = vsyncpa [#allocation4 + $0x1], 0  ;;  %s3049_s24 = smov 0   ;;  %s3051_s25 = smov 0  }
   0x7   :  { %s3053_s26 = smov 0   ;;  %s3055_s27 = smov 0  }
   0x8 LB: > { %s2995_s28 = smov [#allocation5]   ;;  %s3070_s30 = sadd.s32 4294967295, %s2993_s27   ;;  %s2993_s27 = sphi %s3055_s27, %s3848_s27   ;;  %s2989_s26 = sphi %s3053_s26, %s3847_s26   ;;  %s2985_s25 = sphi %s3051_s25, %s3846_s25   ;;  %s2981_s24 = sphi %s3049_s24, %s3845_s24  }
   0x9   : > { %s221_s29 = sshll.u32 %s2995_s28, 4  ;;  %p2086_p0 = scmp.ge.s32.totalorder %s2993_s27, 1  ;;  %s3075_s29 = int_to_ptr.vmem [resolvable:$true] %s221_s29 }
   0xa   : > { %p3824_p1 = scmp.eq.s32.totalorder %s3070_s30, 0  ;;  %p209_p2 = scmp.lt.s32.totalorder %s2993_s27, 9 }
   0xb   : > { %s2996_s9 = smov [#allocation8]   ;;  %s2997_s12 = smov [#allocation11]  }
   0xc   : > { %p3077_p3 = pnand %p2086_p0, %p209_p2  ;;  %s245_s10 = sshll.u32 %s2996_s9, 4  ;;  %s3089_s10 = int_to_ptr.vmem [resolvable:$true] %s245_s10 }
   0xd   : > { %s269_s13 = sshll.u32 %s2997_s12, 4  ;;  %s2717_s16 = scalar_lea.hbm %s3817_s1, 1024  ;;  %s3091_s13 = int_to_ptr.vmem [resolvable:$true] %s269_s13 }
   0xe   : > { %s3827_s8 = scalar_select %p3077_p3, 1, 0 }
   0xf   : > { %p2544_p4 = pneg %p3077_p3  ;;  %p2718_p6 = scmp.ne.s32.totalorder %s3817_s1, %s2717_s16 }
  0x10   : > { %p2724_p10 = scmp.lt.u32.totalorder %s2717_s16, %s3817_s1 }
  0x11   : > { %p3085_p5 = pnand %p2544_p4, %p3824_p1 }
  0x13   : > { %p3101_p7 = pneg %p3085_p5 }
  0x15   : > { %p2720_p8 = pnand %p3101_p7, %p2718_p6 }
  0x17   : > { %p2721_p9 = pneg %p2720_p8 }
  0x19   : > { %p2726_p11 = pnand %p2724_p10, %p2721_p9 }
  0x1b   : > { %2729 = shalt.err (!%p2726_p11)
}
  0x1c   : > { %s2730_s22 = scalar_lea.vmem %s3075_s29, 1024  ;;  %p2738_p2 = scmp.lt.s32.totalorder %s3075_s29, %s3075_s29 }
  0x1d   : > { %p2731_p12 = scmp.ne.s32.totalorder %s3075_s29, %s2730_s22  ;;  %p2739_p4 = scmp.lt.s32.totalorder %s2730_s22, %s2730_s22 }
  0x1f   : > { %p2733_p13 = pnand %p2731_p12, %p3101_p7  ;;  %p2740_p6 = por %p2739_p4, %p2738_p2 }
  0x21   : > { %p2734_p0 = pneg %p2733_p13 }
  0x23   : > { %p2741_p8 = pnand %p2740_p6, %p2734_p0 }
  0x25   : > { %2744 = shalt.err (!%p2741_p8)
}
  0x26   : > { %s2998_s23 = smov 64   ;;  %s2999_s28 = smov 4  }
  0x27   : > { %2547 = dma.hbm_to_vmem [thread:$0]  (!%p3085_p5), %s3817_s1, 1024, %s3075_s29, [#allocation6], %s2998_s23, %s2998_s23, %s2999_s28  }
  0x28   : > { %s2745_s16 = scalar_lea.hbm %s3819_s3, 1024 }
  0x29   : > { %p2746_p9 = scmp.ne.s32.totalorder %s3819_s3, %s2745_s16  ;;  %p2752_p12 = scmp.lt.u32.totalorder %s2745_s16, %s3819_s3 }
  0x2b   : > { %p2748_p10 = pnand %p2746_p9, %p3101_p7 }
  0x2d   : > { %p2749_p11 = pneg %p2748_p10 }
  0x2f   : > { %p2754_p13 = pnand %p2752_p12, %p2749_p11 }
  0x31   : > { %2757 = shalt.err (!%p2754_p13)
}
  0x32   : > { %s2758_s29 = scalar_lea.vmem %s3089_s10, 1024  ;;  %p2766_p6 = scmp.lt.s32.totalorder %s3089_s10, %s3089_s10 }
  0x33   : > { %p2759_p0 = scmp.ne.s32.totalorder %s3089_s10, %s2758_s29  ;;  %p2767_p8 = scmp.lt.s32.totalorder %s2758_s29, %s2758_s29 }
  0x35   : > { %p2761_p2 = pnand %p2759_p0, %p3101_p7  ;;  %p2768_p9 = por %p2767_p8, %p2766_p6 }
  0x37   : > { %p2762_p4 = pneg %p2761_p2 }
  0x39   : > { %p2769_p10 = pnand %p2768_p9, %p2762_p4 }
  0x3b   : > { %2772 = shalt.err (!%p2769_p10)
}
  0x3c   : > { %2553 = dma.hbm_to_vmem [thread:$0]  (!%p3085_p5), %s3819_s3, 1024, %s3089_s10, [#allocation9], %s2998_s23, %s2998_s23, %s2999_s28  }
  0x3d   : > { %s2773_s15 = scalar_lea.hbm %s3821_s5, 1024 }
  0x3e   : > { %p2774_p11 = scmp.ne.s32.totalorder %s3821_s5, %s2773_s15  ;;  %p2780_p0 = scmp.lt.u32.totalorder %s2773_s15, %s3821_s5 }
  0x40   : > { %p2776_p12 = pnand %p2774_p11, %p3101_p7 }
  0x42   : > { %p2777_p13 = pneg %p2776_p12 }
  0x44   : > { %p2782_p2 = pnand %p2780_p0, %p2777_p13 }
  0x46   : > { %2785 = shalt.err (!%p2782_p2)
}
  0x47   : > { %s2786_s10 = scalar_lea.vmem %s3091_s13, 1024  ;;  %p2794_p9 = scmp.lt.s32.totalorder %s3091_s13, %s3091_s13 }
  0x48   : > { %p2787_p4 = scmp.ne.s32.totalorder %s3091_s13, %s2786_s10  ;;  %p2795_p10 = scmp.lt.s32.totalorder %s2786_s10, %s2786_s10 }
  0x4a   : > { %p2789_p6 = pnand %p2787_p4, %p3101_p7  ;;  %p2796_p11 = por %p2795_p10, %p2794_p9 }
  0x4c   : > { %p2790_p8 = pneg %p2789_p6 }
  0x4e   : > { %p2797_p12 = pnand %p2796_p11, %p2790_p8 }
  0x50   : > { %2800 = shalt.err (!%p2797_p12)
}
  0x51   : > { %2559 = dma.hbm_to_vmem [thread:$0]  (!%p3085_p5), %s3821_s5, 1024, %s3091_s13, [#allocation12], %s2998_s23, %s2998_s23, %s2999_s28  }
  0x52   : > { %s3000_s22 = smov [#allocation7]   ;;  %s3001_s12 = smov [#allocation10]  }
  0x53   : > { %s235_s9 = sshll.u32 %s3000_s22, 4  ;;  %s259_s14 = sshll.u32 %s3001_s12, 4  ;;  %s236_s9 = int_to_ptr.vmem [resolvable:$true] %s235_s9  ;;  %s260_s14 = int_to_ptr.vmem [resolvable:$true] %s259_s14 }
  0x54   : > { %s2801_s17 = scalar_lea.hbm %s3818_s2, 16 }
  0x55   : > { %p2802_p13 = scmp.ne.s32.totalorder %s3818_s2, %s2801_s17  ;;  %p2808_p4 = scmp.lt.u32.totalorder %s2801_s17, %s3818_s2 }
  0x57   : > { %p2804_p0 = pnand %p2802_p13, %p3101_p7 }
  0x59   : > { %p2805_p2 = pneg %p2804_p0 }
  0x5b   : > { %p2810_p6 = pnand %p2808_p4, %p2805_p2 }
  0x5d   : > { %2813 = shalt.err (!%p2810_p6)
}
  0x5e   : > { %s2814_s13 = scalar_lea.vmem %s236_s9, 16  ;;  %s2821_s23 = scalar_lea.vmem %s236_s9, 32 }
  0x5f   : > { %p2815_p8 = scmp.ne.s32.totalorder %s236_s9, %s2814_s13  ;;  %p2822_p11 = scmp.lt.s32.totalorder %s236_s9, %s236_s9 }
  0x60   : > { %p2823_p12 = scmp.lt.s32.totalorder %s2821_s23, %s2814_s13 }
  0x61   : > { %p2817_p9 = pnand %p2815_p8, %p3101_p7 }
  0x62   : > { %p2824_p1 = por %p2823_p12, %p2822_p11 }
  0x63   : > { %p2818_p10 = pneg %p2817_p9 }
  0x65   : > { %p2825_p3 = pnand %p2824_p1, %p2818_p10 }
  0x67   : > { %2828 = shalt.err (!%p2825_p3)
}
  0x68   : > { %2550 = dma.hbm_to_vmem [thread:$0]  (!%p3085_p5), %s3818_s2, 16, %s236_s9, [#allocation6]  }
  0x69   : > { %s2829_s15 = scalar_lea.hbm %s3820_s4, 16 }
  0x6a   : > { %p2830_p13 = scmp.ne.s32.totalorder %s3820_s4, %s2829_s15  ;;  %p2836_p3 = scmp.lt.u32.totalorder %s2829_s15, %s3820_s4 }
  0x6c   : > { %p2832_p0 = pnand %p2830_p13, %p3101_p7 }
  0x6e   : > { %p2833_p1 = pneg %p2832_p0 }
  0x70   : > { %p2838_p2 = pnand %p2836_p3, %p2833_p1 }
  0x72   : > { %2841 = shalt.err (!%p2838_p2)
}
  0x73   : > { %s2842_s10 = scalar_lea.vmem %s260_s14, 16  ;;  %s2849_s9 = scalar_lea.vmem %s260_s14, 32 }
  0x74   : > { %p2843_p4 = scmp.ne.s32.totalorder %s260_s14, %s2842_s10  ;;  %p2850_p9 = scmp.lt.s32.totalorder %s260_s14, %s260_s14 }
  0x75   : > { %p2851_p10 = scmp.lt.s32.totalorder %s2849_s9, %s2842_s10 }
  0x76   : > { %p2845_p6 = pnand %p2843_p4, %p3101_p7 }
  0x77   : > { %p2852_p11 = por %p2851_p10, %p2850_p9 }
  0x78   : > { %p2846_p8 = pneg %p2845_p6 }
  0x7a   : > { %p2853_p12 = pnand %p2852_p11, %p2846_p8 }
  0x7c   : > { %2856 = shalt.err (!%p2853_p12)
}
  0x7d   : > { %2556 = dma.hbm_to_vmem [thread:$0]  (!%p3085_p5), %s3820_s4, 16, %s260_s14, [#allocation9]  }
  0x7e   : > { %s3002_s23 = smov [#allocation13]   ;;  %s2857_s12 = scalar_lea.hbm %s3822_s6, 16 }
  0x7f   : > { %s283_s28 = sshll.u32 %s3002_s23, 4  ;;  %p2858_p13 = scmp.ne.s32.totalorder %s3822_s6, %s2857_s12  ;;  %s284_s28 = int_to_ptr.vmem [resolvable:$true] %s283_s28 }
  0x80   : > { %p2864_p3 = scmp.lt.u32.totalorder %s2857_s12, %s3822_s6 }
  0x81   : > { %p2860_p0 = pnand %p2858_p13, %p3101_p7 }
  0x83   : > { %p2861_p1 = pneg %p2860_p0 }
  0x85   : > { %p2866_p2 = pnand %p2864_p3, %p2861_p1 }
  0x87   : > { %2869 = shalt.err (!%p2866_p2)
}
  0x88   : > { %s2870_s14 = scalar_lea.vmem %s284_s28, 16  ;;  %s2877_s20 = scalar_lea.vmem %s284_s28, 32 }
  0x89   : > { %p2871_p4 = scmp.ne.s32.totalorder %s284_s28, %s2870_s14  ;;  %p2878_p9 = scmp.lt.s32.totalorder %s284_s28, %s284_s28 }
  0x8a   : > { %p2879_p10 = scmp.lt.s32.totalorder %s2877_s20, %s2870_s14 }
  0x8b   : > { %p2873_p6 = pnand %p2871_p4, %p3101_p7 }
  0x8c   : > { %p2880_p11 = por %p2879_p10, %p2878_p9 }
  0x8d   : > { %p2874_p8 = pneg %p2873_p6 }
  0x8f   : > { %p2881_p12 = pnand %p2880_p11, %p2874_p8 }
  0x91   : > { %2884 = shalt.err (!%p2881_p12)
}
  0x92   : > { %2562 = dma.hbm_to_vmem [thread:$0]  (!%p3085_p5), %s3822_s6, 16, %s284_s28, [#allocation12]  }
  0x93   : > { %s2085_s19 = sadd.s32 4294967294, %s2993_s27   ;;  %s3233_s11 = sadd.s32 1, %s2993_s27  }
  0x94   : > { %s30_s21 = ssub.s32 %s2993_s27, %s3233_s11  ;;  %s33_s13 = sadd.s32 1, %s2989_s26 }
  0x95   : > { %p31_p7 = scmp.eq.s32.totalorder %s30_s21, 0  ;;  %p40_p13 = scmp.ne.s32.totalorder %s2989_s26, %s2985_s25 }
  0x96   : > { %p41_p0 = scmp.eq.s32.totalorder %s2993_s27, 0  ;;  %p46_p1 = scmp.ne.s32.totalorder %s2985_s25, %s2981_s24 }
  0x97   : > { %s3244_s23 = scalar_select %p31_p7, %s2989_s26, %s33_s13  }
  0x98   : > { %p3246_p3 = por %p41_p0, %p40_p13  ;;  %p3831_p2 = scmp.eq.s32.totalorder %s3070_s30, 0 }
  0x99   : > { %p196_p4 = scmp.eq.s32.totalorder %s3070_s30, 7  ;;  %p202_p6 = scmp.eq.s32.totalorder %s2085_s19, 7 }
  0x9a   : > { %p3252_p5 = por %p3831_p2, %p46_p1  ;;  %p2577_p8 = scmp.lt.s32.totalorder %s2993_s27, 8 }
  0x9b   : > { %s294_s22 = sand.u32 1, %s2989_s26   ;;  %p3259_p9 = por %p196_p4, %p40_p13 }
  0x9c   : > { %p3263_p10 = por %p202_p6, %p46_p1  ;;  %s2094_s16 = sshll.u32 %s294_s22, 9 }
  0x9d   : > { %s3833_s12 = scalar_select %p3259_p9, 1, 0 }
  0x9e   : > { %s3834_s15 = scalar_select %p3263_p10, 1, 0 }
  0x9f   : > { %s2138_s17 = sshll.u32 %s2993_s27, 13  ;;  %s298_s10 = scalar_lea.vmem [#allocation2], %s2094_s16 }
  0xa0   : > { %s3271_s20 = scalar_lea.hbm %s3816_s0, %s2138_s17  ;;  %s305_s9 = sshll.u32 %s298_s10, 4  ;;  %s3273_s9 = int_to_ptr.vmem [resolvable:$true] %s305_s9 }
  0xa1   : > { %p3277_p11 = pnand %p2577_p8, %p3246_p3  ;;  %s3281_s21 = scalar_lea.sflag [#allocation3], %s294_s22 }
  0xa2   : > { %s2885_s13 = scalar_lea.hbm %s3271_s20, 8192  ;;  %s2890_s29 = scalar_lea.hbm %s3816_s0, 65536 }
  0xa3   : > { %p2886_p12 = scmp.ne.s32.totalorder %s3271_s20, %s2885_s13  ;;  %p2887_p7 = pneg %p3277_p11 }
  0xa4   : > { %p2891_p1 = scmp.lt.u32.totalorder %s3271_s20, %s3816_s0  ;;  %p2892_p3 = scmp.lt.u32.totalorder %s2890_s29, %s2885_s13 }
  0xa5   : > { %p2888_p13 = pnand %p2887_p7, %p2886_p12  ;;  %p2894_p4 = scmp.lt.u32.totalorder %s2885_s13, %s3271_s20 }
  0xa6   : > { %p2893_p2 = por %p2892_p3, %p2891_p1 }
  0xa7   : > { %p2889_p0 = pneg %p2888_p13 }
  0xa8   : > { %p2895_p6 = por %p2894_p4, %p2893_p2 }
  0xaa   : > { %p2896_p8 = pnand %p2895_p6, %p2889_p0 }
  0xac   : > { %2899 = shalt.err (!%p2896_p8)
}
  0xad   : > { %s2900_s22 = scalar_lea.vmem %s3273_s9, 8192  ;;  %s3003_s10 = smov [#allocation2]  }
  0xae   : > { %p2901_p12 = scmp.ne.s32.totalorder %s3273_s9, %s2900_s22  ;;  %s2905_s16 = sshll.u32 %s3003_s10, 4  ;;  %s2906_s16 = int_to_ptr.vmem [resolvable:$false] %s2905_s16 }
  0xaf   : > { %s2907_s17 = scalar_lea.vmem %s2906_s16, 16384  ;;  %p2908_p9 = scmp.lt.s32.totalorder %s3273_s9, %s2906_s16 }
  0xb0   : > { %p2903_p13 = pnand %p2901_p12, %p2887_p7  ;;  %p2909_p1 = scmp.lt.s32.totalorder %s2907_s17, %s2900_s22 }
  0xb2   : > { %p2904_p10 = pneg %p2903_p13  ;;  %p2910_p3 = por %p2909_p1, %p2908_p9 }
  0xb4   : > { %p2911_p2 = pnand %p2910_p3, %p2904_p10 }
  0xb6   : > { %2914 = shalt.err (!%p2911_p2)
}
  0xb7   : > { %s3004_s13 = smov 128   ;;  %s3005_s29 = smov 8  }
  0xb8   : > { %2566 = dma.hbm_to_vmem [thread:$0]  (!%p3277_p11), %s3271_s20, 8192, %s3273_s9, %s3281_s21, %s3004_s13, %s3004_s13, %s3005_s29  }
  0xb9   : > { %p3836_p7 = scmp.ne.s32.totalorder %s3827_s8, 0 }
  0xba   : > { %s3312_s18 = sand.u32 (!%p3836_p7), 1, %s2985_s25  }
  0xbb   : > { %317 = sbr.rel (%p3836_p7) target bundleno = 1038 (0x40e), region = 48  ;;  %s2098_s14 = sshll.u32 (!%p3836_p7), %s3312_s18, 9 }
  0xbc   : > { %s320_s22 = scalar_lea.sflag (!%p3836_p7), [#allocation3], %s3312_s18  ;;  %s3318_s10 = scalar_lea.vmem (!%p3836_p7), [#allocation2], %s2098_s14 }
  0xc2   : > { %2960 = dma.done.wait (%p3252_p5), %s320_s22, 8192  }
  0xc3   : > { %2962 = vsyncadd (%p3252_p5), %s320_s22, 4294959104  ;;  %p3837_p9 = scmp.eq.s32.totalorder %s3070_s30, 0 }
  0xc5   : > { %2964 = dma.done.wait (%p3837_p9), [#allocation6], 1040   ;;  %p3838_p10 = pmov %p3837_p9 }
  0xc6   : > { %p3839_p11 = pmov %p3837_p9 }
  0xc7   : > { %2966 = vsyncadd (%p3838_p10), [#allocation6], 4294966256 }
  0xc8   : > { %2968 = dma.done.wait (%p3839_p11), [#allocation9], 1040   ;;  %p3840_p0 = pmov %p3837_p9 }
  0xca   : > { %2970 = vsyncadd (%p3840_p0), [#allocation9], 4294966256  ;;  %p3841_p4 = pmov %p3840_p0 }
  0xcb   : > { %p3842_p6 = pmov %p3840_p0 }
  0xcc   : > { %2972 = dma.done.wait (%p3841_p4), [#allocation12], 1040  }
  0xcd   : > { %2974 = vsyncadd (%p3842_p6), [#allocation12], 4294966256  ;;  %v2629_v0 = vld [vmem:[#allocation5] sm:$0xff]   ;;  %v2630_v1 = vld [vmem:[#allocation5 + $0x8] sm:$0xff]   ;;  %s3580_s8 = scalar_lea.vmem [#allocation14], %s2098_s14  ;;  %s2139_s28 = sshll.u32 %s3070_s30, 13 }
  0xce   : > { %2260 = vmatprep.subr.bf16.mxu0 %v2629_v0  ;;  %2500 = vmatprep.subr.bf16.mxu1 %v2629_v0  ;;  %v2631_v2 = vld [vmem:[#allocation5 + $0x10] sm:$0xff]   ;;  %v2632_v3 = vld [vmem:[#allocation5 + $0x18] sm:$0xff]   ;;  %v381_v4 = vld [vmem:[%s3318_s10] sm:$0xff]  ;;  %s1955_s20 = sshll.u32 %s3580_s8, 4  ;;  %s3768_s21 = scalar_lea.hbm %s3823_s7, %s2139_s28  ;;  %s3770_s20 = int_to_ptr.vmem [resolvable:$true] %s1955_s20 }
  0xcf   : > { %2261 = vmatpush3.bf16.msra.mxu0 %v2629_v0  ;;  %2508 = vmatpush3.bf16.msra.mxu1 %v2629_v0  ;;  %v382_v5 = vld [vmem:[%s3318_s10 + $0x8] sm:$0xff]  ;;  %v2633_v7 = vld [vmem:[#allocation5 + $0x20] sm:$0xff]   ;;  %v2635_v11 = vld [vmem:[#allocation5 + $0x30] sm:$0xff]   ;;  %s1942_s30 = scalar_lea.sflag [#allocation4], %s3312_s18  ;;  %s2915_s16 = scalar_lea.vmem %s3770_s20, 8192 }
  0xd0   : > { %2262 = vmatprep.subr.bf16.mxu0 %v2630_v1  ;;  %2501 = vmatprep.subr.bf16.mxu1 %v2630_v1  ;;  %v445_v6 = vpack.c.bf16 %v382_v5, %v381_v4  ;;  %v2634_v8 = vld [vmem:[#allocation5 + $0x28] sm:$0xff]   ;;  %v413_v9 = vld [vmem:[%s3318_s10 + $0x100] sm:$0xff]  ;;  %v2636_v13 = vld [vmem:[#allocation5 + $0x38] sm:$0xff]   ;;  %p2916_p5 = scmp.ne.s32.totalorder %s3770_s20, %s2915_s16  ;;  %p3843_p8 = scmp.ne.s32.totalorder %s3833_s12, 0 }
  0xd1   : > { %v414_v10 = vld [vmem:[%s3318_s10 + $0x108] sm:$0xff]  ;;  %v383_v14 = vld [vmem:[%s3318_s10 + $0x10] sm:$0xff]  ;;  %v384_v15 = vld [vmem:[%s3318_s10 + $0x18] sm:$0xff]  ;;  %s3006_s17 = smov [#allocation14]  }
  0xd2   : > { %2276 = vmatprep.mubr.bf16.mxu0 %v445_v6  ;;  %v461_v12 = vpack.c.bf16 %v414_v10, %v413_v9  ;;  %v385_v16 = vld [vmem:[%s3318_s10 + $0x20] sm:$0xff]  ;;  %v386_v17 = vld [vmem:[%s3318_s10 + $0x28] sm:$0xff]  ;;  %v415_v18 = vld [vmem:[%s3318_s10 + $0x110] sm:$0xff]  ;;  %v446_v22 = vpack.c.bf16 %v384_v15, %v383_v14  ;;  %p2917_p12 = pnand %p2916_p5, %p3843_p8  ;;  %s2919_s13 = sshll.u32 %s3006_s17, 4  ;;  %s2920_s13 = int_to_ptr.vmem [resolvable:$false] %s2919_s13 }
  0xd3   : > { %2263 = vmatpush3.bf16.msra.mxu0 %v2630_v1  ;;  %2509 = vmatpush3.bf16.msra.mxu1 %v2630_v1  ;;  %v416_v19 = vld [vmem:[%s3318_s10 + $0x118] sm:$0xff]  ;;  %v417_v20 = vld [vmem:[%s3318_s10 + $0x120] sm:$0xff]  ;;  %v418_v21 = vld [vmem:[%s3318_s10 + $0x128] sm:$0xff]  ;;  %v447_v24 = vpack.c.bf16 %v386_v17, %v385_v16  ;;  %s2921_s29 = scalar_lea.vmem %s2920_s13, 16384  ;;  %p2922_p1 = scmp.lt.s32.totalorder %s3770_s20, %s2920_s13 }
  0xd4   : > { %2264 = vmatprep.subr.bf16.mxu0 %v2631_v2  ;;  %2502 = vmatprep.subr.bf16.mxu1 %v2631_v2  ;;  %v2637_v23 = vld [vmem:[#allocation8] sm:$0xff]   ;;  %v462_v25 = vpack.c.bf16 %v416_v19, %v415_v18  ;;  %v463_v26 = vpack.c.bf16 %v418_v21, %v417_v20  ;;  %v387_v27 = vld [vmem:[%s3318_s10 + $0x30] sm:$0xff]  ;;  %v388_v28 = vld [vmem:[%s3318_s10 + $0x38] sm:$0xff]  ;;  %p2918_p13 = pneg %p2917_p12  ;;  %p2923_p3 = scmp.lt.s32.totalorder %s2921_s29, %s2915_s16 }
  0xd5   : > { %2308 = vmatprep.mubr.bf16.mxu1 %v461_v12  ;;  %v2638_v29 = vld [vmem:[#allocation8 + $0x8] sm:$0xff]   ;;  %v389_v30 = vld [vmem:[%s3318_s10 + $0x40] sm:$0xff]  ;;  %v420_v33 = vld [vmem:[%s3318_s10 + $0x138] sm:$0xff]  ;;  %v448_v37 = vpack.c.bf16 %v388_v28, %v387_v27 }
  0xd6   : > { %v390_v31 = vld [vmem:[%s3318_s10 + $0x48] sm:$0xff]  ;;  %v419_v32 = vld [vmem:[%s3318_s10 + $0x130] sm:$0xff]  ;;  %v421_v34 = vld [vmem:[%s3318_s10 + $0x140] sm:$0xff]  ;;  %p2924_p2 = por %p2923_p3, %p2922_p1 }
  0xd7   : > { %2265 = vmatpush3.bf16.msra.mxu0 %v2631_v2  ;;  %2510 = vmatpush3.bf16.msra.mxu1 %v2631_v2  ;;  %v422_v35 = vld [vmem:[%s3318_s10 + $0x148] sm:$0xff]  ;;  %v2639_v36 = vld [vmem:[#allocation8 + $0x10] sm:$0xff]   ;;  %v449_v38 = vpack.c.bf16 %v390_v31, %v389_v30  ;;  %v464_v39 = vpack.c.bf16 %v420_v33, %v419_v32  ;;  %v2640_v40 = vld [vmem:[#allocation8 + $0x18] sm:$0xff]  }
  0xd8   : > { %2266 = vmatprep.subr.bf16.mxu0 %v2632_v3  ;;  %2503 = vmatprep.subr.bf16.mxu1 %v2632_v3  ;;  %v465_v41 = vpack.c.bf16 %v422_v35, %v421_v34  ;;  %v391_v42 = vld [vmem:[%s3318_s10 + $0x50] sm:$0xff]  ;;  %v392_v43 = vld [vmem:[%s3318_s10 + $0x58] sm:$0xff]  ;;  %v393_v44 = vld [vmem:[%s3318_s10 + $0x60] sm:$0xff]  ;;  %p2925_p7 = pnand %p2924_p2, %p2918_p13 }
  0xd9   : > { %v394_v45 = vld [vmem:[%s3318_s10 + $0x68] sm:$0xff]  ;;  %v423_v46 = vld [vmem:[%s3318_s10 + $0x150] sm:$0xff]  ;;  %v424_v47 = vld [vmem:[%s3318_s10 + $0x158] sm:$0xff]  ;;  %v450_v51 = vpack.c.bf16 %v392_v43, %v391_v42 }
  0xda   : > { %v425_v48 = vld [vmem:[%s3318_s10 + $0x160] sm:$0xff]  ;;  %v426_v49 = vld [vmem:[%s3318_s10 + $0x168] sm:$0xff]  ;;  %v451_v52 = vpack.c.bf16 %v394_v45, %v393_v44  ;;  %v466_v53 = vpack.c.bf16 %v424_v47, %v423_v46  ;;  %v395_v56 = vld [vmem:[%s3318_s10 + $0x70] sm:$0xff] }
  0xdb   : > { %2267 = vmatpush3.bf16.msra.mxu0 %v2632_v3  ;;  %2511 = vmatpush3.bf16.msra.mxu1 %v2632_v3  ;;  %v2641_v50 = vld [vmem:[#allocation8 + $0x20] sm:$0xff]   ;;  %v467_v54 = vpack.c.bf16 %v426_v49, %v425_v48  ;;  %v2642_v55 = vld [vmem:[#allocation8 + $0x28] sm:$0xff]   ;;  %v396_v57 = vld [vmem:[%s3318_s10 + $0x78] sm:$0xff] }
  0xdc   : > { %2268 = vmatprep.subr.bf16.mxu0 %v2633_v7  ;;  %2504 = vmatprep.subr.bf16.mxu1 %v2633_v7  ;;  %v397_v58 = vld [vmem:[%s3318_s10 + $0x80] sm:$0xff]  ;;  %v398_v59 = vld [vmem:[%s3318_s10 + $0x88] sm:$0xff]  ;;  %v427_v60 = vld [vmem:[%s3318_s10 + $0x170] sm:$0xff]  ;;  %v452_v1 = vpack.c.bf16 %v396_v57, %v395_v56 }
  0xdd   : > { %v428_v61 = vld [vmem:[%s3318_s10 + $0x178] sm:$0xff]  ;;  %v429_v62 = vld [vmem:[%s3318_s10 + $0x180] sm:$0xff]  ;;  %v430_v63 = vld [vmem:[%s3318_s10 + $0x188] sm:$0xff]  ;;  %v453_v2 = vpack.c.bf16 %v398_v59, %v397_v58 }
  0xde   : > { %v2643_v0 = vld [vmem:[#allocation8 + $0x30] sm:$0xff]   ;;  %v468_v3 = vpack.c.bf16 %v428_v61, %v427_v60  ;;  %v469_v4 = vpack.c.bf16 %v430_v63, %v429_v62  ;;  %v434_v12 = vld [vmem:[%s3318_s10 + $0x1a8] sm:$0xff]  ;;  %v405_v19 = vld [vmem:[%s3318_s10 + $0xc0] sm:$0xff] }
  0xdf   : > { %2269 = vmatpush3.bf16.msra.mxu0 %v2633_v7  ;;  %2512 = vmatpush3.bf16.msra.mxu1 %v2633_v7  ;;  %v399_v5 = vld [vmem:[%s3318_s10 + $0x90] sm:$0xff]  ;;  %v400_v6 = vld [vmem:[%s3318_s10 + $0x98] sm:$0xff]  ;;  %v401_v7 = vld [vmem:[%s3318_s10 + $0xa0] sm:$0xff] }
  0xe0   : > { %2270 = vmatprep.subr.bf16.mxu0 %v2634_v8  ;;  %2505 = vmatprep.subr.bf16.mxu1 %v2634_v8  ;;  %v431_v9 = vld [vmem:[%s3318_s10 + $0x190] sm:$0xff]  ;;  %v432_v10 = vld [vmem:[%s3318_s10 + $0x198] sm:$0xff]  ;;  %v406_v20 = vld [vmem:[%s3318_s10 + $0xc8] sm:$0xff] }
  0xe1   : > { %v470_v15 = vpack.c.bf16 %v432_v10, %v431_v9  ;;  %v403_v17 = vld [vmem:[%s3318_s10 + $0xb0] sm:$0xff]  ;;  %v404_v18 = vld [vmem:[%s3318_s10 + $0xb8] sm:$0xff]  ;;  %v409_v31 = vld [vmem:[%s3318_s10 + $0xe0] sm:$0xff] }
  0xe2   : > { %v435_v21 = vld [vmem:[%s3318_s10 + $0x1b0] sm:$0xff]  ;;  %v408_v30 = vld [vmem:[%s3318_s10 + $0xd8] sm:$0xff]  ;;  %v410_v32 = vld [vmem:[%s3318_s10 + $0xe8] sm:$0xff] }
  0xe3   : > { %2271 = vmatpush3.bf16.msra.mxu0 %v2634_v8  ;;  %2513 = vmatpush3.bf16.msra.mxu1 %v2634_v8  ;;  %v402_v8 = vld [vmem:[%s3318_s10 + $0xa8] sm:$0xff]  ;;  %v439_v33 = vld [vmem:[%s3318_s10 + $0x1d0] sm:$0xff]  ;;  %v440_v34 = vld [vmem:[%s3318_s10 + $0x1d8] sm:$0xff] }
  0xe4   : > { %2272 = vmatprep.subr.bf16.mxu0 %v2635_v11  ;;  %2506 = vmatprep.subr.bf16.mxu1 %v2635_v11  ;;  %v455_v14 = vpack.c.bf16 %v402_v8, %v401_v7  ;;  %v441_v35 = vld [vmem:[%s3318_s10 + $0x1e0] sm:$0xff]  ;;  %v412_v42 = vld [vmem:[%s3318_s10 + $0xf8] sm:$0xff]  ;;  %v443_v43 = vld [vmem:[%s3318_s10 + $0x1f0] sm:$0xff] }
  0xe5   : > { %v444_v44 = vld [vmem:[%s3318_s10 + $0x1f8] sm:$0xff]  ;;  %v3400_v48 = vld [vmem:[#allocation7] ss:$0 sm:$0xff]  ;;  %v2645_v61 = vld [vmem:[#allocation11] sm:$0xff]  }
  0xe6   : > { %v476_v46 = vpack.c.bf16 %v444_v44, %v443_v43  ;;  %v2644_v47 = vld [vmem:[#allocation8 + $0x38] sm:$0xff]   ;;  %v2646_v62 = vld [vmem:[#allocation11 + $0x8] sm:$0xff]  }
  0xe7   : > { %2273 = vmatpush3.bf16.msra.mxu0 %v2635_v11  ;;  %2514 = vmatpush3.bf16.msra.mxu1 %v2635_v11  ;;  %v433_v11 = vld [vmem:[%s3318_s10 + $0x1a0] sm:$0xff] }
  0xe8   : > { %2274 = vmatprep.subr.bf16.mxu0 %v2636_v13  ;;  %2507 = vmatprep.subr.bf16.mxu1 %v2636_v13  ;;  %v471_v16 = vpack.c.bf16 %v434_v12, %v433_v11  ;;  %v2647_v12 = vld [vmem:[#allocation11 + $0x10] sm:$0xff]  }
  0xeb   : > { %2275 = vmatpush3.bf16.msra.mxu0 %v2636_v13  ;;  %2515 = vmatpush3.bf16.msra.mxu1 %v2636_v13  ;;  %v454_v13 = vpack.c.bf16 %v400_v6, %v399_v5 }
  0xec   : > { %2340 = vmatprep.subr.bf16.mxu1 %v2637_v23  ;;  %2420 = vmatprep.subr.bf16.mxu0 %v2645_v61 }
  0xee   : > { %2277 = vmatmul.mubr.bf16.vlgmr.msra.gmra.mrb[0].mxu0 %v446_v22  ;;  %2309 = vmatmul.mubr.bf16.vlgmr.msra.gmra.mrb[0].mxu1 %v462_v25  ;;  %v436_v22 = vld [vmem:[%s3318_s10 + $0x1b8] sm:$0xff]  ;;  %v456_v25 = vpack.c.bf16 %v404_v18, %v403_v17 }
  0xef   : > { %2280 = vmatprep.mubr.bf16.mxu0 %v447_v24  ;;  %2312 = vmatprep.mubr.bf16.mxu1 %v463_v26  ;;  %v438_v24 = vld [vmem:[%s3318_s10 + $0x1c8] sm:$0xff]  ;;  %v457_v26 = vpack.c.bf16 %v406_v20, %v405_v19  ;;  %v472_v27 = vpack.c.bf16 %v436_v22, %v435_v21 }
  0xf0   : > { %2341 = vmatpush3.bf16.msra.mxu1 %v2637_v23  ;;  %v437_v23 = vld [vmem:[%s3318_s10 + $0x1c0] sm:$0xff]  ;;  %2421 = vmatpush3.bf16.msra.mxu0 %v2645_v61 }
  0xf1   : > { %2342 = vmatprep.subr.bf16.mxu1 %v2638_v29  ;;  %v473_v28 = vpack.c.bf16 %v438_v24, %v437_v23  ;;  %2422 = vmatprep.subr.bf16.mxu0 %v2646_v62 }
  0xf4   : > { %2343 = vmatpush3.bf16.msra.mxu1 %v2638_v29  ;;  %v407_v29 = vld [vmem:[%s3318_s10 + $0xd0] sm:$0xff]  ;;  %2423 = vmatpush3.bf16.msra.mxu0 %v2646_v62 }
  0xf5   : > { %2344 = vmatprep.subr.bf16.mxu1 %v2639_v36  ;;  %2424 = vmatprep.subr.bf16.mxu0 %v2647_v12 }
  0xf6   : > { %2281 = vmatmul.mubr.bf16.gmra.mrb[4].mxu0 %v448_v37  ;;  %2313 = vmatmul.mubr.bf16.gmra.mrb[4].mxu1 %v464_v39  ;;  %v458_v37 = vpack.c.bf16 %v408_v30, %v407_v29  ;;  %v474_v39 = vpack.c.bf16 %v440_v34, %v439_v33 }
  0xf7   : > { %2284 = vmatprep.mubr.bf16.mxu0 %v449_v38  ;;  %2316 = vmatprep.mubr.bf16.mxu1 %v465_v41  ;;  %v459_v38 = vpack.c.bf16 %v410_v32, %v409_v31  ;;  %v411_v41 = vld [vmem:[%s3318_s10 + $0xf0] sm:$0xff] }
  0xf8   : > { %2345 = vmatpush3.bf16.msra.mxu1 %v2639_v36  ;;  %v442_v36 = vld [vmem:[%s3318_s10 + $0x1e8] sm:$0xff]  ;;  %v460_v45 = vpack.c.bf16 %v412_v42, %v411_v41  ;;  %2425 = vmatpush3.bf16.msra.mxu0 %v2647_v12 }
  0xf9   : > { %2346 = vmatprep.subr.bf16.mxu1 %v2640_v40  ;;  %v2649_v42 = vld [vmem:[#allocation11 + $0x20] sm:$0xff]  }
  0xfc   : > { %2347 = vmatpush3.bf16.msra.mxu1 %v2640_v40  ;;  %v475_v40 = vpack.c.bf16 %v442_v36, %v441_v35 }
  0xfd   : > { %2348 = vmatprep.subr.bf16.mxu1 %v2641_v50 }
  0xfe   : > { %2285 = vmatmul.mubr.bf16.gmra.mrb[8].mxu0 %v450_v51  ;;  %2317 = vmatmul.mubr.bf16.gmra.mrb[8].mxu1 %v466_v53 }
  0xff   : > { %2288 = vmatprep.mubr.bf16.mxu0 %v451_v52  ;;  %2320 = vmatprep.mubr.bf16.mxu1 %v467_v54 }
 0x100   : > { %2349 = vmatpush3.bf16.msra.mxu1 %v2641_v50 }
 0x101   : > { %2350 = vmatprep.subr.bf16.mxu1 %v2642_v55 }
 0x104   : > { %2351 = vmatpush3.bf16.msra.mxu1 %v2642_v55 }
 0x105   : > { %2352 = vmatprep.subr.bf16.mxu1 %v2643_v0 }
 0x106   : > { %2289 = vmatmul.mubr.bf16.gmra.mrb[12].mxu0 %v452_v1  ;;  %2321 = vmatmul.mubr.bf16.gmra.mrb[12].mxu1 %v468_v3 }
 0x107   : > { %2292 = vmatprep.mubr.bf16.mxu0 %v453_v2  ;;  %2324 = vmatprep.mubr.bf16.mxu1 %v469_v4 }
 0x108   : > { %2353 = vmatpush3.bf16.msra.mxu1 %v2643_v0 }
 0x109   : > { %2354 = vmatprep.subr.bf16.mxu1 %v2644_v47 }
 0x10c   : > { %2355 = vmatpush3.bf16.msra.mxu1 %v2644_v47 }
 0x10e   : > { %2293 = vmatmul.mubr.bf16.gmra.mrb[16].mxu0 %v454_v13  ;;  %2325 = vmatmul.mubr.bf16.gmra.mrb[16].mxu1 %v470_v15 }
 0x10f   : > { %2296 = vmatprep.mubr.bf16.mxu0 %v455_v14  ;;  %2328 = vmatprep.mubr.bf16.mxu1 %v471_v16 }
 0x116   : > { %2297 = vmatmul.mubr.bf16.gmra.mrb[20].mxu0 %v456_v25  ;;  %2329 = vmatmul.mubr.bf16.gmra.mrb[20].mxu1 %v472_v27 }
 0x117   : > { %2300 = vmatprep.mubr.bf16.mxu0 %v457_v26  ;;  %2332 = vmatprep.mubr.bf16.mxu1 %v473_v28  ;;  %v2648_v28 = vld [vmem:[#allocation11 + $0x18] sm:$0xff]  }
 0x118   : > { %2426 = vmatprep.subr.bf16.mxu0 %v2648_v28 }
 0x119   : > { %2427 = vmatpush3.bf16.msra.mxu0 %v2648_v28 }
 0x11a   : > { %2428 = vmatprep.subr.bf16.mxu0 %v2649_v42 }
 0x11d   : > { %2429 = vmatpush3.bf16.msra.mxu0 %v2649_v42 }
 0x11e   : > { %2301 = vmatmul.mubr.bf16.gmra.mrb[24].mxu0 %v458_v37  ;;  %2333 = vmatmul.mubr.bf16.gmra.mrb[24].mxu1 %v474_v39 }
 0x11f   : > { %2304 = vmatprep.mubr.bf16.mxu0 %v459_v38  ;;  %2336 = vmatprep.mubr.bf16.mxu1 %v475_v40 }
 0x126   : > { %2305 = vmatmul.mubr.bf16.gmra.mrb[28].mxu0 %v460_v45  ;;  %2337 = vmatmul.mubr.bf16.gmra.mrb[28].mxu1 %v476_v46 }
 0x1c1   : > { %v2278_v49 = vpop.f32.mrb[0].mxu0  ;;  %v2310_v52 = vpop.f32.mrb[0].mxu1 }
 0x1c2   : > { %v591_v50 = vadd.f32 %v2278_v49, %v3400_v48  ;;  %v582_v51 = vpop.f32.mrb[1].mxu0  ;;  %v719_v55 = vadd.f32 %v2310_v52, %v3400_v48  ;;  %v710_v56 = vpop.f32.mrb[1].mxu1 }
 0x1c3   : > { %v583_v53 = vadd.f32 %v3400_v48, %v582_v51  ;;  %v2279_v54 = vpop.f32.mrb[2].mxu0  ;;  %v711_v59 = vadd.f32 %v3400_v48, %v710_v56  ;;  %v2311_v60 = vpop.f32.mrb[2].mxu1 }
 0x1c4   : > { %v594_v57 = vadd.f32 %v2279_v54, %v3400_v48  ;;  %v585_v58 = vpop.f32.mrb[3].mxu0  ;;  %v871_v0 = vmax.f32 %v719_v55, 0.0  ;;  %v722_v1 = vadd.f32 %v2311_v60, %v3400_v48  ;;  %v713_v2 = vpop.f32.mrb[3].mxu1  ;;  %v839_v3 = vmax.f32 %v591_v50, 0.0 }
 0x1c5   : > { %v586_v63 = vadd.f32 %v3400_v48, %v585_v58  ;;  %v869_v5 = vmax.f32 %v711_v59, 0.0  ;;  %v714_v6 = vadd.f32 %v3400_v48, %v713_v2  ;;  %v837_v7 = vmax.f32 %v583_v53, 0.0  ;;  %v2650_v59 = vld [vmem:[#allocation11 + $0x28] sm:$0xff]  }
 0x1c6   : > { %v840_v4 = vmax.f32 %v594_v57, 0.0  ;;  %v872_v9 = vmax.f32 %v722_v1, 0.0  ;;  %2430 = vmatprep.subr.bf16.mxu0 %v2650_v59 }
 0x1c7   : > { %v838_v8 = vmax.f32 %v586_v63, 0.0  ;;  %v870_v11 = vmax.f32 %v714_v6, 0.0  ;;  %2431 = vmatpush3.bf16.msra.mxu0 %v2650_v59 }
 0x1c8   : > { %v902_v10 = vpack.c.bf16 %v840_v4, %v839_v3  ;;  %v3410_v15 = vpack.c.bf16 %v872_v9, %v871_v0  ;;  %v2651_v9 = vld [vmem:[#allocation11 + $0x30] sm:$0xff]  }
 0x1c9   : > { %v901_v13 = vpack.c.bf16 %v838_v8, %v837_v7  ;;  %v2282_v14 = vpop.f32.mrb[4].mxu0  ;;  %v3413_v18 = vpack.c.bf16 %v870_v11, %v869_v5  ;;  %v2314_v19 = vpop.f32.mrb[4].mxu1  ;;  %2432 = vmatprep.subr.bf16.mxu0 %v2651_v9 }
 0x1ca   : > { %v607_v16 = vadd.f32 %v2282_v14, %v3400_v48  ;;  %v598_v17 = vpop.f32.mrb[5].mxu0  ;;  %v735_v22 = vadd.f32 %v2314_v19, %v3400_v48  ;;  %v726_v23 = vpop.f32.mrb[5].mxu1 }
 0x1cb   : > { %v599_v20 = vadd.f32 %v3400_v48, %v598_v17  ;;  %v2283_v21 = vpop.f32.mrb[6].mxu0  ;;  %2356 = vmatprep.mubr.bf16.mxu1 %v901_v13  ;;  %v727_v26 = vadd.f32 %v3400_v48, %v726_v23  ;;  %v2315_v27 = vpop.f32.mrb[6].mxu1  ;;  %2433 = vmatpush3.bf16.msra.mxu0 %v2651_v9 }
 0x1cc   : > { %v610_v24 = vadd.f32 %v2283_v21, %v3400_v48  ;;  %v601_v25 = vpop.f32.mrb[7].mxu0  ;;  %2357 = vmatmul.mubr.bf16.vlgmr.msra.gmra.mrb[32].mxu1 %v902_v10  ;;  %v875_v30 = vmax.f32 %v735_v22, 0.0  ;;  %v738_v31 = vadd.f32 %v2315_v27, %v3400_v48  ;;  %v729_v32 = vpop.f32.mrb[7].mxu1  ;;  %v843_v33 = vmax.f32 %v607_v16, 0.0 }
 0x1cd   : > { %v602_v29 = vadd.f32 %v3400_v48, %v601_v25  ;;  %v873_v35 = vmax.f32 %v727_v26, 0.0  ;;  %v730_v36 = vadd.f32 %v3400_v48, %v729_v32  ;;  %v841_v37 = vmax.f32 %v599_v20, 0.0 }
 0x1ce   : > { %v844_v34 = vmax.f32 %v610_v24, 0.0  ;;  %v876_v39 = vmax.f32 %v738_v31, 0.0 }
 0x1cf   : > { %v842_v38 = vmax.f32 %v602_v29, 0.0  ;;  %v874_v41 = vmax.f32 %v730_v36, 0.0 }
 0x1d0   : > { %v904_v40 = vpack.c.bf16 %v844_v34, %v843_v33  ;;  %v3422_v45 = vpack.c.bf16 %v876_v39, %v875_v30 }
 0x1d1   : > { %v903_v43 = vpack.c.bf16 %v842_v38, %v841_v37  ;;  %v2286_v44 = vpop.f32.mrb[8].mxu0  ;;  %v3425_v49 = vpack.c.bf16 %v874_v41, %v873_v35  ;;  %v2318_v50 = vpop.f32.mrb[8].mxu1 }
 0x1d2   : > { %v623_v46 = vadd.f32 %v2286_v44, %v3400_v48  ;;  %v614_v47 = vpop.f32.mrb[9].mxu0  ;;  %v751_v53 = vadd.f32 %v2318_v50, %v3400_v48  ;;  %v742_v54 = vpop.f32.mrb[9].mxu1 }
 0x1d3   : > { %v615_v51 = vadd.f32 %v3400_v48, %v614_v47  ;;  %v2287_v52 = vpop.f32.mrb[10].mxu0  ;;  %2360 = vmatprep.mubr.bf16.mxu1 %v903_v43  ;;  %v743_v57 = vadd.f32 %v3400_v48, %v742_v54  ;;  %v2319_v58 = vpop.f32.mrb[10].mxu1 }
 0x1d4   : > { %v626_v55 = vadd.f32 %v2287_v52, %v3400_v48  ;;  %v617_v56 = vpop.f32.mrb[11].mxu0  ;;  %2361 = vmatmul.mubr.bf16.gmra.mrb[36].mxu1 %v904_v40  ;;  %v879_v61 = vmax.f32 %v751_v53, 0.0  ;;  %v754_v62 = vadd.f32 %v2319_v58, %v3400_v48  ;;  %v745_v63 = vpop.f32.mrb[11].mxu1  ;;  %v847_v0 = vmax.f32 %v623_v46, 0.0 }
 0x1d5   : > { %v618_v60 = vadd.f32 %v3400_v48, %v617_v56  ;;  %v877_v2 = vmax.f32 %v743_v57, 0.0  ;;  %v746_v3 = vadd.f32 %v3400_v48, %v745_v63  ;;  %v845_v4 = vmax.f32 %v615_v51, 0.0 }
 0x1d6   : > { %v848_v1 = vmax.f32 %v626_v55, 0.0  ;;  %v880_v6 = vmax.f32 %v754_v62, 0.0 }
 0x1d7   : > { %v846_v5 = vmax.f32 %v618_v60, 0.0  ;;  %v878_v8 = vmax.f32 %v746_v3, 0.0 }
 0x1d8   : > { %v906_v7 = vpack.c.bf16 %v848_v1, %v847_v0  ;;  %v3434_v12 = vpack.c.bf16 %v880_v6, %v879_v61 }
 0x1d9   : > { %v905_v10 = vpack.c.bf16 %v846_v5, %v845_v4  ;;  %v2290_v11 = vpop.f32.mrb[12].mxu0  ;;  %v3437_v16 = vpack.c.bf16 %v878_v8, %v877_v2  ;;  %v2322_v17 = vpop.f32.mrb[12].mxu1 }
 0x1da   : > { %v639_v13 = vadd.f32 %v2290_v11, %v3400_v48  ;;  %v630_v14 = vpop.f32.mrb[13].mxu0  ;;  %v767_v21 = vadd.f32 %v2322_v17, %v3400_v48  ;;  %v758_v22 = vpop.f32.mrb[13].mxu1 }
 0x1db   : > { %v631_v19 = vadd.f32 %v3400_v48, %v630_v14  ;;  %v2291_v20 = vpop.f32.mrb[14].mxu0  ;;  %2364 = vmatprep.mubr.bf16.mxu1 %v905_v10  ;;  %v759_v25 = vadd.f32 %v3400_v48, %v758_v22  ;;  %v2323_v26 = vpop.f32.mrb[14].mxu1 }
 0x1dc   : > { %v642_v23 = vadd.f32 %v2291_v20, %v3400_v48  ;;  %v633_v24 = vpop.f32.mrb[15].mxu0  ;;  %2365 = vmatmul.mubr.bf16.gmra.mrb[40].mxu1 %v906_v7  ;;  %v883_v28 = vmax.f32 %v767_v21, 0.0  ;;  %v770_v29 = vadd.f32 %v2323_v26, %v3400_v48  ;;  %v761_v30 = vpop.f32.mrb[15].mxu1  ;;  %v851_v31 = vmax.f32 %v639_v13, 0.0 }
 0x1dd   : > { %v634_v27 = vadd.f32 %v3400_v48, %v633_v24  ;;  %v881_v33 = vmax.f32 %v759_v25, 0.0  ;;  %v762_v34 = vadd.f32 %v3400_v48, %v761_v30  ;;  %v849_v35 = vmax.f32 %v631_v19, 0.0 }
 0x1de   : > { %v852_v32 = vmax.f32 %v642_v23, 0.0  ;;  %v884_v37 = vmax.f32 %v770_v29, 0.0 }
 0x1df   : > { %v850_v36 = vmax.f32 %v634_v27, 0.0  ;;  %v882_v39 = vmax.f32 %v762_v34, 0.0 }
 0x1e0   : > { %v908_v38 = vpack.c.bf16 %v852_v32, %v851_v31  ;;  %v3446_v42 = vpack.c.bf16 %v884_v37, %v883_v28 }
 0x1e1   : > { %v907_v40 = vpack.c.bf16 %v850_v36, %v849_v35  ;;  %v2294_v41 = vpop.f32.mrb[16].mxu0  ;;  %v3449_v46 = vpack.c.bf16 %v882_v39, %v881_v33  ;;  %v2326_v47 = vpop.f32.mrb[16].mxu1 }
 0x1e2   : > { %v655_v43 = vadd.f32 %v2294_v41, %v3400_v48  ;;  %v646_v44 = vpop.f32.mrb[17].mxu0  ;;  %v783_v52 = vadd.f32 %v2326_v47, %v3400_v48  ;;  %v774_v53 = vpop.f32.mrb[17].mxu1 }
 0x1e3   : > { %v647_v50 = vadd.f32 %v3400_v48, %v646_v44  ;;  %v2295_v51 = vpop.f32.mrb[18].mxu0  ;;  %2368 = vmatprep.mubr.bf16.mxu1 %v907_v40  ;;  %v775_v56 = vadd.f32 %v3400_v48, %v774_v53  ;;  %v2327_v57 = vpop.f32.mrb[18].mxu1 }
 0x1e4   : > { %v658_v54 = vadd.f32 %v2295_v51, %v3400_v48  ;;  %v649_v55 = vpop.f32.mrb[19].mxu0  ;;  %2369 = vmatmul.mubr.bf16.gmra.mrb[44].mxu1 %v908_v38  ;;  %v887_v59 = vmax.f32 %v783_v52, 0.0  ;;  %v786_v60 = vadd.f32 %v2327_v57, %v3400_v48  ;;  %v777_v61 = vpop.f32.mrb[19].mxu1  ;;  %v855_v62 = vmax.f32 %v655_v43, 0.0 }
 0x1e5   : > { %v650_v58 = vadd.f32 %v3400_v48, %v649_v55  ;;  %v885_v0 = vmax.f32 %v775_v56, 0.0  ;;  %v778_v1 = vadd.f32 %v3400_v48, %v777_v61  ;;  %v853_v2 = vmax.f32 %v647_v50, 0.0 }
 0x1e6   : > { %v856_v63 = vmax.f32 %v658_v54, 0.0  ;;  %v888_v4 = vmax.f32 %v786_v60, 0.0 }
 0x1e7   : > { %v854_v3 = vmax.f32 %v650_v58, 0.0  ;;  %v886_v6 = vmax.f32 %v778_v1, 0.0 }
 0x1e8   : > { %v910_v5 = vpack.c.bf16 %v856_v63, %v855_v62  ;;  %v3458_v9 = vpack.c.bf16 %v888_v4, %v887_v59 }
 0x1e9   : > { %v909_v7 = vpack.c.bf16 %v854_v3, %v853_v2  ;;  %v2298_v8 = vpop.f32.mrb[20].mxu0  ;;  %v3461_v13 = vpack.c.bf16 %v886_v6, %v885_v0  ;;  %v2330_v14 = vpop.f32.mrb[20].mxu1 }
 0x1ea   : > { %v671_v10 = vadd.f32 %v2298_v8, %v3400_v48  ;;  %v662_v11 = vpop.f32.mrb[21].mxu0  ;;  %v799_v20 = vadd.f32 %v2330_v14, %v3400_v48  ;;  %v790_v21 = vpop.f32.mrb[21].mxu1 }
 0x1eb   : > { %v663_v17 = vadd.f32 %v3400_v48, %v662_v11  ;;  %v2299_v19 = vpop.f32.mrb[22].mxu0  ;;  %2372 = vmatprep.mubr.bf16.mxu1 %v909_v7  ;;  %v791_v24 = vadd.f32 %v3400_v48, %v790_v21  ;;  %v2331_v25 = vpop.f32.mrb[22].mxu1 }
 0x1ec   : > { %v674_v22 = vadd.f32 %v2299_v19, %v3400_v48  ;;  %v665_v23 = vpop.f32.mrb[23].mxu0  ;;  %2373 = vmatmul.mubr.bf16.gmra.mrb[48].mxu1 %v910_v5  ;;  %v891_v27 = vmax.f32 %v799_v20, 0.0  ;;  %v802_v28 = vadd.f32 %v2331_v25, %v3400_v48  ;;  %v793_v29 = vpop.f32.mrb[23].mxu1  ;;  %v859_v30 = vmax.f32 %v671_v10, 0.0 }
 0x1ed   : > { %v666_v26 = vadd.f32 %v3400_v48, %v665_v23  ;;  %v889_v32 = vmax.f32 %v791_v24, 0.0  ;;  %v794_v33 = vadd.f32 %v3400_v48, %v793_v29  ;;  %v857_v34 = vmax.f32 %v663_v17, 0.0 }
 0x1ee   : > { %v860_v31 = vmax.f32 %v674_v22, 0.0  ;;  %v892_v36 = vmax.f32 %v802_v28, 0.0 }
 0x1ef   : > { %v858_v35 = vmax.f32 %v666_v26, 0.0  ;;  %v890_v38 = vmax.f32 %v794_v33, 0.0 }
 0x1f0   : > { %v912_v37 = vpack.c.bf16 %v860_v31, %v859_v30  ;;  %v3470_v41 = vpack.c.bf16 %v892_v36, %v891_v27 }
 0x1f1   : > { %v911_v39 = vpack.c.bf16 %v858_v35, %v857_v34  ;;  %v2302_v40 = vpop.f32.mrb[24].mxu0  ;;  %v3473_v47 = vpack.c.bf16 %v890_v38, %v889_v32  ;;  %v2334_v50 = vpop.f32.mrb[24].mxu1 }
 0x1f2   : > { %v687_v43 = vadd.f32 %v2302_v40, %v3400_v48  ;;  %v678_v44 = vpop.f32.mrb[25].mxu0  ;;  %v815_v53 = vadd.f32 %v2334_v50, %v3400_v48  ;;  %v806_v54 = vpop.f32.mrb[25].mxu1 }
 0x1f3   : > { %v679_v51 = vadd.f32 %v3400_v48, %v678_v44  ;;  %v2303_v52 = vpop.f32.mrb[26].mxu0  ;;  %2376 = vmatprep.mubr.bf16.mxu1 %v911_v39  ;;  %v807_v57 = vadd.f32 %v3400_v48, %v806_v54  ;;  %v2335_v58 = vpop.f32.mrb[26].mxu1 }
 0x1f4   : > { %v690_v55 = vadd.f32 %v2303_v52, %v3400_v48  ;;  %v681_v56 = vpop.f32.mrb[27].mxu0  ;;  %2377 = vmatmul.mubr.bf16.gmra.mrb[52].mxu1 %v912_v37  ;;  %v895_v60 = vmax.f32 %v815_v53, 0.0  ;;  %v818_v61 = vadd.f32 %v2335_v58, %v3400_v48  ;;  %v809_v62 = vpop.f32.mrb[27].mxu1  ;;  %v863_v63 = vmax.f32 %v687_v43, 0.0 }
 0x1f5   : > { %v682_v59 = vadd.f32 %v3400_v48, %v681_v56  ;;  %v893_v1 = vmax.f32 %v807_v57, 0.0  ;;  %v810_v2 = vadd.f32 %v3400_v48, %v809_v62  ;;  %v861_v3 = vmax.f32 %v679_v51, 0.0 }
 0x1f6   : > { %v864_v0 = vmax.f32 %v690_v55, 0.0  ;;  %v896_v5 = vmax.f32 %v818_v61, 0.0 }
 0x1f7   : > { %v862_v4 = vmax.f32 %v682_v59, 0.0  ;;  %v894_v7 = vmax.f32 %v810_v2, 0.0 }
 0x1f8   : > { %v914_v6 = vpack.c.bf16 %v864_v0, %v863_v63  ;;  %v930_v11 = vpack.c.bf16 %v896_v5, %v895_v60 }
 0x1f9   : > { %v913_v8 = vpack.c.bf16 %v862_v4, %v861_v3  ;;  %v2306_v10 = vpop.f32.mrb[28].mxu0  ;;  %v929_v19 = vpack.c.bf16 %v894_v7, %v893_v1  ;;  %v2338_v20 = vpop.f32.mrb[28].mxu1 }
 0x1fa   : > { %v703_v14 = vadd.f32 %v2306_v10, %v3400_v48  ;;  %v694_v17 = vpop.f32.mrb[29].mxu0  ;;  %v831_v23 = vadd.f32 %v2338_v20, %v3400_v48  ;;  %v822_v24 = vpop.f32.mrb[29].mxu1 }
 0x1fb   : > { %v695_v21 = vadd.f32 %v3400_v48, %v694_v17  ;;  %v2307_v22 = vpop.f32.mrb[30].mxu0  ;;  %2380 = vmatprep.mubr.bf16.mxu1 %v913_v8  ;;  %v823_v27 = vadd.f32 %v3400_v48, %v822_v24  ;;  %v2339_v28 = vpop.f32.mrb[30].mxu1 }
 0x1fc   : > { %v706_v25 = vadd.f32 %v2307_v22, %v3400_v48  ;;  %v697_v26 = vpop.f32.mrb[31].mxu0  ;;  %2381 = vmatmul.mubr.bf16.gmra.mrb[56].mxu1 %v914_v6  ;;  %v899_v30 = vmax.f32 %v831_v23, 0.0  ;;  %v834_v31 = vadd.f32 %v2339_v28, %v3400_v48  ;;  %v825_v32 = vpop.f32.mrb[31].mxu1  ;;  %v867_v33 = vmax.f32 %v703_v14, 0.0 }
 0x1fd   : > { %v698_v29 = vadd.f32 %v3400_v48, %v697_v26  ;;  %v897_v35 = vmax.f32 %v823_v27, 0.0  ;;  %v826_v36 = vadd.f32 %v3400_v48, %v825_v32  ;;  %v865_v37 = vmax.f32 %v695_v21, 0.0  ;;  %v2652_v48 = vld [vmem:[#allocation11 + $0x38] sm:$0xff]  }
 0x1fe   : > { %v868_v34 = vmax.f32 %v706_v25, 0.0  ;;  %v900_v39 = vmax.f32 %v834_v31, 0.0  ;;  %2434 = vmatprep.subr.bf16.mxu0 %v2652_v48 }
 0x1ff   : > { %v866_v38 = vmax.f32 %v698_v29, 0.0  ;;  %v898_v43 = vmax.f32 %v826_v36, 0.0  ;;  %2435 = vmatpush3.bf16.msra.mxu0 %v2652_v48 }
 0x200   : > { %v916_v40 = vpack.c.bf16 %v868_v34, %v867_v33  ;;  %v932_v50 = vpack.c.bf16 %v900_v39, %v899_v30 }
 0x201   : > { %v915_v44 = vpack.c.bf16 %v866_v38, %v865_v37  ;;  %v931_v51 = vpack.c.bf16 %v898_v43, %v897_v35 }
 0x203   : > { %2384 = vmatprep.mubr.bf16.mxu1 %v915_v44 }
 0x204   : > { %2385 = vmatmul.mubr.bf16.gmra.mrb[60].mxu1 %v916_v40 }
 0x205   : > { %2388 = vmatprep.mubr.bf16.mxu1 %v3413_v18 }
 0x20c   : > { %2389 = vmatmul.mubr.bf16.gmra.mrb[64].mxu1 %v3410_v15  ;;  %v3502_v15 = vld [vmem:[#allocation10] ss:$0 sm:$0xff] }
 0x20d   : > { %2392 = vmatprep.mubr.bf16.mxu1 %v3425_v49 }
 0x214   : > { %2393 = vmatmul.mubr.bf16.gmra.mrb[68].mxu1 %v3422_v45 }
 0x215   : > { %2396 = vmatprep.mubr.bf16.mxu1 %v3437_v16 }
 0x21c   : > { %2397 = vmatmul.mubr.bf16.gmra.mrb[72].mxu1 %v3434_v12 }
 0x21d   : > { %2400 = vmatprep.mubr.bf16.mxu1 %v3449_v46 }
 0x224   : > { %2401 = vmatmul.mubr.bf16.gmra.mrb[76].mxu1 %v3446_v42 }
 0x225   : > { %2404 = vmatprep.mubr.bf16.mxu1 %v3461_v13 }
 0x22c   : > { %2405 = vmatmul.mubr.bf16.gmra.mrb[80].mxu1 %v3458_v9 }
 0x22d   : > { %2408 = vmatprep.mubr.bf16.mxu1 %v3473_v47 }
 0x234   : > { %2409 = vmatmul.mubr.bf16.gmra.mrb[84].mxu1 %v3470_v41 }
 0x235   : > { %2412 = vmatprep.mubr.bf16.mxu1 %v929_v19 }
 0x23c   : > { %2413 = vmatmul.mubr.bf16.gmra.mrb[88].mxu1 %v930_v11 }
 0x23d   : > { %2416 = vmatprep.mubr.bf16.mxu1 %v931_v51 }
 0x244   : > { %2417 = vmatmul.mubr.bf16.gmra.mrb[92].mxu1 %v932_v50 }
 0x29f   : > { %v2358_v18 = vpop.f32.mrb[32].mxu1 }
 0x2a0   : > { %v1047_v45 = vadd.f32 %v2358_v18, %v3502_v15  ;;  %v1038_v49 = vpop.f32.mrb[33].mxu1 }
 0x2a1   : > { %v1039_v12 = vadd.f32 %v3502_v15, %v1038_v49  ;;  %v2359_v16 = vpop.f32.mrb[34].mxu1 }
 0x2a2   : > { %v1050_v42 = vadd.f32 %v2359_v16, %v3502_v15  ;;  %v1041_v46 = vpop.f32.mrb[35].mxu1  ;;  %v1295_v13 = vmax.f32 %v1047_v45, 0.0 }
 0x2a3   : > { %v1042_v9 = vadd.f32 %v3502_v15, %v1041_v46  ;;  %v1293_v47 = vmax.f32 %v1039_v12, 0.0 }
 0x2a4   : > { %v1296_v41 = vmax.f32 %v1050_v42, 0.0 }
 0x2a5   : > { %v1294_v52 = vmax.f32 %v1042_v9, 0.0 }
 0x2a6   : > { %v1358_v53 = vpack.c.bf16 %v1296_v41, %v1295_v13 }
 0x2a7   : > { %v1357_v54 = vpack.c.bf16 %v1294_v52, %v1293_v47  ;;  %v2362_v55 = vpop.f32.mrb[36].mxu1 }
 0x2a8   : > { %v1063_v56 = vadd.f32 %v2362_v55, %v3502_v15  ;;  %v1054_v57 = vpop.f32.mrb[37].mxu1 }
 0x2a9   : > { %v1055_v58 = vadd.f32 %v3502_v15, %v1054_v57  ;;  %v2363_v59 = vpop.f32.mrb[38].mxu1  ;;  %2436 = vmatprep.mubr.bf16.mxu0 %v1357_v54 }
 0x2aa   : > { %v1066_v60 = vadd.f32 %v2363_v59, %v3502_v15  ;;  %v1057_v61 = vpop.f32.mrb[39].mxu1  ;;  %2437 = vmatmul.mubr.bf16.vlgmr.msra.gmra.mrb[32].mxu0 %v1358_v53  ;;  %v1299_v63 = vmax.f32 %v1063_v56, 0.0 }
 0x2ab   : > { %v1058_v62 = vadd.f32 %v3502_v15, %v1057_v61  ;;  %v1297_v1 = vmax.f32 %v1055_v58, 0.0 }
 0x2ac   : > { %v1300_v0 = vmax.f32 %v1066_v60, 0.0 }
 0x2ad   : > { %v1298_v2 = vmax.f32 %v1058_v62, 0.0 }
 0x2ae   : > { %v1360_v3 = vpack.c.bf16 %v1300_v0, %v1299_v63 }
 0x2af   : > { %v1359_v4 = vpack.c.bf16 %v1298_v2, %v1297_v1  ;;  %v2366_v5 = vpop.f32.mrb[40].mxu1 }
 0x2b0   : > { %v1079_v6 = vadd.f32 %v2366_v5, %v3502_v15  ;;  %v1070_v7 = vpop.f32.mrb[41].mxu1 }
 0x2b1   : > { %v1071_v8 = vadd.f32 %v3502_v15, %v1070_v7  ;;  %v2367_v10 = vpop.f32.mrb[42].mxu1  ;;  %2440 = vmatprep.mubr.bf16.mxu0 %v1359_v4 }
 0x2b2   : > { %v1082_v11 = vadd.f32 %v2367_v10, %v3502_v15  ;;  %v1073_v14 = vpop.f32.mrb[43].mxu1  ;;  %2441 = vmatmul.mubr.bf16.gmra.mrb[36].mxu0 %v1360_v3  ;;  %v1303_v19 = vmax.f32 %v1079_v6, 0.0 }
 0x2b3   : > { %v1074_v17 = vadd.f32 %v3502_v15, %v1073_v14  ;;  %v1301_v21 = vmax.f32 %v1071_v8, 0.0 }
 0x2b4   : > { %v1304_v20 = vmax.f32 %v1082_v11, 0.0 }
 0x2b5   : > { %v1302_v22 = vmax.f32 %v1074_v17, 0.0 }
 0x2b6   : > { %v1362_v23 = vpack.c.bf16 %v1304_v20, %v1303_v19 }
 0x2b7   : > { %v1361_v24 = vpack.c.bf16 %v1302_v22, %v1301_v21  ;;  %v2370_v25 = vpop.f32.mrb[44].mxu1 }
 0x2b8   : > { %v1095_v26 = vadd.f32 %v2370_v25, %v3502_v15  ;;  %v1086_v27 = vpop.f32.mrb[45].mxu1 }
 0x2b9   : > { %v1087_v28 = vadd.f32 %v3502_v15, %v1086_v27  ;;  %v2371_v29 = vpop.f32.mrb[46].mxu1  ;;  %2444 = vmatprep.mubr.bf16.mxu0 %v1361_v24 }
 0x2ba   : > { %v1098_v30 = vadd.f32 %v2371_v29, %v3502_v15  ;;  %v1089_v31 = vpop.f32.mrb[47].mxu1  ;;  %2445 = vmatmul.mubr.bf16.gmra.mrb[40].mxu0 %v1362_v23  ;;  %v1307_v33 = vmax.f32 %v1095_v26, 0.0 }
 0x2bb   : > { %v1090_v32 = vadd.f32 %v3502_v15, %v1089_v31  ;;  %v1305_v35 = vmax.f32 %v1087_v28, 0.0 }
 0x2bc   : > { %v1308_v34 = vmax.f32 %v1098_v30, 0.0 }
 0x2bd   : > { %v1306_v36 = vmax.f32 %v1090_v32, 0.0 }
 0x2be   : > { %v1364_v37 = vpack.c.bf16 %v1308_v34, %v1307_v33 }
 0x2bf   : > { %v1363_v38 = vpack.c.bf16 %v1306_v36, %v1305_v35  ;;  %v2374_v39 = vpop.f32.mrb[48].mxu1 }
 0x2c0   : > { %v1111_v40 = vadd.f32 %v2374_v39, %v3502_v15  ;;  %v1102_v43 = vpop.f32.mrb[49].mxu1 }
 0x2c1   : > { %v1103_v44 = vadd.f32 %v3502_v15, %v1102_v43  ;;  %v2375_v50 = vpop.f32.mrb[50].mxu1  ;;  %2448 = vmatprep.mubr.bf16.mxu0 %v1363_v38 }
 0x2c2   : > { %v1114_v51 = vadd.f32 %v2375_v50, %v3502_v15  ;;  %v1105_v48 = vpop.f32.mrb[51].mxu1  ;;  %2449 = vmatmul.mubr.bf16.gmra.mrb[44].mxu0 %v1364_v37  ;;  %v1311_v45 = vmax.f32 %v1111_v40, 0.0 }
 0x2c3   : > { %v1106_v18 = vadd.f32 %v3502_v15, %v1105_v48  ;;  %v1309_v12 = vmax.f32 %v1103_v44, 0.0 }
 0x2c4   : > { %v1312_v49 = vmax.f32 %v1114_v51, 0.0 }
 0x2c5   : > { %v1310_v16 = vmax.f32 %v1106_v18, 0.0 }
 0x2c6   : > { %v1366_v42 = vpack.c.bf16 %v1312_v49, %v1311_v45 }
 0x2c7   : > { %v1365_v46 = vpack.c.bf16 %v1310_v16, %v1309_v12  ;;  %v2378_v9 = vpop.f32.mrb[52].mxu1 }
 0x2c8   : > { %v1127_v13 = vadd.f32 %v2378_v9, %v3502_v15  ;;  %v1118_v41 = vpop.f32.mrb[53].mxu1 }
 0x2c9   : > { %v1119_v47 = vadd.f32 %v3502_v15, %v1118_v41  ;;  %v2379_v52 = vpop.f32.mrb[54].mxu1  ;;  %2452 = vmatprep.mubr.bf16.mxu0 %v1365_v46 }
 0x2ca   : > { %v1130_v53 = vadd.f32 %v2379_v52, %v3502_v15  ;;  %v1121_v54 = vpop.f32.mrb[55].mxu1  ;;  %2453 = vmatmul.mubr.bf16.gmra.mrb[48].mxu0 %v1366_v42  ;;  %v1315_v56 = vmax.f32 %v1127_v13, 0.0 }
 0x2cb   : > { %v1122_v55 = vadd.f32 %v3502_v15, %v1121_v54  ;;  %v1313_v58 = vmax.f32 %v1119_v47, 0.0 }
 0x2cc   : > { %v1316_v57 = vmax.f32 %v1130_v53, 0.0 }
 0x2cd   : > { %v1314_v59 = vmax.f32 %v1122_v55, 0.0 }
 0x2ce   : > { %v1368_v60 = vpack.c.bf16 %v1316_v57, %v1315_v56 }
 0x2cf   : > { %v1367_v61 = vpack.c.bf16 %v1314_v59, %v1313_v58  ;;  %v2382_v62 = vpop.f32.mrb[56].mxu1 }
 0x2d0   : > { %v1143_v63 = vadd.f32 %v2382_v62, %v3502_v15  ;;  %v1134_v0 = vpop.f32.mrb[57].mxu1 }
 0x2d1   : > { %v1135_v1 = vadd.f32 %v3502_v15, %v1134_v0  ;;  %v2383_v2 = vpop.f32.mrb[58].mxu1  ;;  %2456 = vmatprep.mubr.bf16.mxu0 %v1367_v61 }
 0x2d2   : > { %v1146_v3 = vadd.f32 %v2383_v2, %v3502_v15  ;;  %v1137_v4 = vpop.f32.mrb[59].mxu1  ;;  %2457 = vmatmul.mubr.bf16.gmra.mrb[52].mxu0 %v1368_v60  ;;  %v1319_v6 = vmax.f32 %v1143_v63, 0.0 }
 0x2d3   : > { %v1138_v5 = vadd.f32 %v3502_v15, %v1137_v4  ;;  %v1317_v8 = vmax.f32 %v1135_v1, 0.0 }
 0x2d4   : > { %v1320_v7 = vmax.f32 %v1146_v3, 0.0 }
 0x2d5   : > { %v1318_v10 = vmax.f32 %v1138_v5, 0.0 }
 0x2d6   : > { %v1370_v11 = vpack.c.bf16 %v1320_v7, %v1319_v6 }
 0x2d7   : > { %v1369_v14 = vpack.c.bf16 %v1318_v10, %v1317_v8  ;;  %v2386_v17 = vpop.f32.mrb[60].mxu1 }
 0x2d8   : > { %v1159_v19 = vadd.f32 %v2386_v17, %v3502_v15  ;;  %v1150_v20 = vpop.f32.mrb[61].mxu1 }
 0x2d9   : > { %v1151_v21 = vadd.f32 %v3502_v15, %v1150_v20  ;;  %v2387_v22 = vpop.f32.mrb[62].mxu1  ;;  %2460 = vmatprep.mubr.bf16.mxu0 %v1369_v14 }
 0x2da   : > { %v1162_v23 = vadd.f32 %v2387_v22, %v3502_v15  ;;  %v1153_v24 = vpop.f32.mrb[63].mxu1  ;;  %2461 = vmatmul.mubr.bf16.gmra.mrb[56].mxu0 %v1370_v11  ;;  %v1323_v26 = vmax.f32 %v1159_v19, 0.0 }
 0x2db   : > { %v1154_v25 = vadd.f32 %v3502_v15, %v1153_v24  ;;  %v1321_v28 = vmax.f32 %v1151_v21, 0.0 }
 0x2dc   : > { %v1324_v27 = vmax.f32 %v1162_v23, 0.0 }
 0x2dd   : > { %v1322_v29 = vmax.f32 %v1154_v25, 0.0 }
 0x2de   : > { %v1372_v30 = vpack.c.bf16 %v1324_v27, %v1323_v26 }
 0x2df   : > { %v1371_v31 = vpack.c.bf16 %v1322_v29, %v1321_v28  ;;  %v2390_v32 = vpop.f32.mrb[64].mxu1 }
 0x2e0   : > { %v1175_v33 = vadd.f32 %v2390_v32, %v3502_v15  ;;  %v1166_v34 = vpop.f32.mrb[65].mxu1 }
 0x2e1   : > { %v1167_v35 = vadd.f32 %v3502_v15, %v1166_v34  ;;  %v2391_v36 = vpop.f32.mrb[66].mxu1  ;;  %2464 = vmatprep.mubr.bf16.mxu0 %v1371_v31 }
 0x2e2   : > { %v1178_v37 = vadd.f32 %v2391_v36, %v3502_v15  ;;  %v1169_v38 = vpop.f32.mrb[67].mxu1  ;;  %2465 = vmatmul.mubr.bf16.gmra.mrb[60].mxu0 %v1372_v30  ;;  %v1327_v40 = vmax.f32 %v1175_v33, 0.0 }
 0x2e3   : > { %v1170_v39 = vadd.f32 %v3502_v15, %v1169_v38  ;;  %v1325_v44 = vmax.f32 %v1167_v35, 0.0 }
 0x2e4   : > { %v1328_v43 = vmax.f32 %v1178_v37, 0.0 }
 0x2e5   : > { %v1326_v50 = vmax.f32 %v1170_v39, 0.0 }
 0x2e6   : > { %v1374_v51 = vpack.c.bf16 %v1328_v43, %v1327_v40 }
 0x2e7   : > { %v1373_v48 = vpack.c.bf16 %v1326_v50, %v1325_v44  ;;  %v2394_v18 = vpop.f32.mrb[68].mxu1 }
 0x2e8   : > { %v1191_v45 = vadd.f32 %v2394_v18, %v3502_v15  ;;  %v1182_v49 = vpop.f32.mrb[69].mxu1 }
 0x2e9   : > { %v1183_v12 = vadd.f32 %v3502_v15, %v1182_v49  ;;  %v2395_v16 = vpop.f32.mrb[70].mxu1  ;;  %2468 = vmatprep.mubr.bf16.mxu0 %v1373_v48 }
 0x2ea   : > { %v1194_v42 = vadd.f32 %v2395_v16, %v3502_v15  ;;  %v1185_v46 = vpop.f32.mrb[71].mxu1  ;;  %2469 = vmatmul.mubr.bf16.gmra.mrb[64].mxu0 %v1374_v51  ;;  %v1331_v13 = vmax.f32 %v1191_v45, 0.0 }
 0x2eb   : > { %v1186_v9 = vadd.f32 %v3502_v15, %v1185_v46  ;;  %v1329_v47 = vmax.f32 %v1183_v12, 0.0 }
 0x2ec   : > { %v1332_v41 = vmax.f32 %v1194_v42, 0.0 }
 0x2ed   : > { %v1330_v52 = vmax.f32 %v1186_v9, 0.0 }
 0x2ee   : > { %v1376_v53 = vpack.c.bf16 %v1332_v41, %v1331_v13 }
 0x2ef   : > { %v1375_v54 = vpack.c.bf16 %v1330_v52, %v1329_v47  ;;  %v2398_v55 = vpop.f32.mrb[72].mxu1 }
 0x2f0   : > { %v1207_v56 = vadd.f32 %v2398_v55, %v3502_v15  ;;  %v1198_v57 = vpop.f32.mrb[73].mxu1 }
 0x2f1   : > { %v1199_v58 = vadd.f32 %v3502_v15, %v1198_v57  ;;  %v2399_v59 = vpop.f32.mrb[74].mxu1  ;;  %2472 = vmatprep.mubr.bf16.mxu0 %v1375_v54 }
 0x2f2   : > { %v1210_v60 = vadd.f32 %v2399_v59, %v3502_v15  ;;  %v1201_v61 = vpop.f32.mrb[75].mxu1  ;;  %2473 = vmatmul.mubr.bf16.gmra.mrb[68].mxu0 %v1376_v53  ;;  %v1335_v63 = vmax.f32 %v1207_v56, 0.0 }
 0x2f3   : > { %v1202_v62 = vadd.f32 %v3502_v15, %v1201_v61  ;;  %v1333_v1 = vmax.f32 %v1199_v58, 0.0 }
 0x2f4   : > { %v1336_v0 = vmax.f32 %v1210_v60, 0.0 }
 0x2f5   : > { %v1334_v2 = vmax.f32 %v1202_v62, 0.0 }
 0x2f6   : > { %v1378_v3 = vpack.c.bf16 %v1336_v0, %v1335_v63 }
 0x2f7   : > { %v1377_v4 = vpack.c.bf16 %v1334_v2, %v1333_v1  ;;  %v2402_v5 = vpop.f32.mrb[76].mxu1 }
 0x2f8   : > { %v1223_v6 = vadd.f32 %v2402_v5, %v3502_v15  ;;  %v1214_v7 = vpop.f32.mrb[77].mxu1 }
 0x2f9   : > { %v1215_v8 = vadd.f32 %v3502_v15, %v1214_v7  ;;  %v2403_v10 = vpop.f32.mrb[78].mxu1  ;;  %2476 = vmatprep.mubr.bf16.mxu0 %v1377_v4 }
 0x2fa   : > { %v1226_v11 = vadd.f32 %v2403_v10, %v3502_v15  ;;  %v1217_v14 = vpop.f32.mrb[79].mxu1  ;;  %2477 = vmatmul.mubr.bf16.gmra.mrb[72].mxu0 %v1378_v3  ;;  %v1339_v19 = vmax.f32 %v1223_v6, 0.0 }
 0x2fb   : > { %v1218_v17 = vadd.f32 %v3502_v15, %v1217_v14  ;;  %v1337_v21 = vmax.f32 %v1215_v8, 0.0 }
 0x2fc   : > { %v1340_v20 = vmax.f32 %v1226_v11, 0.0 }
 0x2fd   : > { %v1338_v22 = vmax.f32 %v1218_v17, 0.0  ;;  %v3568_v17 = vld [vmem:[#allocation13] ss:$0 sm:$0xff] }
 0x2fe   : > { %v1380_v23 = vpack.c.bf16 %v1340_v20, %v1339_v19 }
 0x2ff   : > { %v1379_v24 = vpack.c.bf16 %v1338_v22, %v1337_v21  ;;  %v2406_v25 = vpop.f32.mrb[80].mxu1 }
 0x300   : > { %v1239_v26 = vadd.f32 %v2406_v25, %v3502_v15  ;;  %v1230_v27 = vpop.f32.mrb[81].mxu1 }
 0x301   : > { %v1231_v28 = vadd.f32 %v3502_v15, %v1230_v27  ;;  %v2407_v29 = vpop.f32.mrb[82].mxu1  ;;  %2480 = vmatprep.mubr.bf16.mxu0 %v1379_v24  ;;  %v2654_v27 = vld [vmem:[%s3318_s10] sm:$0xff] }
 0x302   : > { %v1242_v30 = vadd.f32 %v2407_v29, %v3502_v15  ;;  %v1233_v31 = vpop.f32.mrb[83].mxu1  ;;  %2481 = vmatmul.mubr.bf16.gmra.mrb[76].mxu0 %v1380_v23  ;;  %v1343_v33 = vmax.f32 %v1239_v26, 0.0  ;;  %v2653_v23 = vld [vmem:[%s3318_s10 + $0x10] sm:$0xff] }
 0x303   : > { %v1234_v32 = vadd.f32 %v3502_v15, %v1233_v31  ;;  %v1341_v35 = vmax.f32 %v1231_v28, 0.0  ;;  %v2655_v31 = vld [vmem:[%s3318_s10 + $0x18] sm:$0xff] }
 0x304   : > { %v1344_v34 = vmax.f32 %v1242_v30, 0.0 }
 0x305   : > { %v1342_v36 = vmax.f32 %v1234_v32, 0.0 }
 0x306   : > { %v1382_v37 = vpack.c.bf16 %v1344_v34, %v1343_v33  ;;  %v2656_v34 = vld [vmem:[%s3318_s10 + $0x8] sm:$0xff] }
 0x307   : > { %v1381_v38 = vpack.c.bf16 %v1342_v36, %v1341_v35  ;;  %v2410_v39 = vpop.f32.mrb[84].mxu1 }
 0x308   : > { %v1255_v40 = vadd.f32 %v2410_v39, %v3502_v15  ;;  %v1246_v43 = vpop.f32.mrb[85].mxu1 }
 0x309   : > { %v1247_v44 = vadd.f32 %v3502_v15, %v1246_v43  ;;  %v2411_v50 = vpop.f32.mrb[86].mxu1  ;;  %2484 = vmatprep.mubr.bf16.mxu0 %v1381_v38 }
 0x30a   : > { %v1258_v51 = vadd.f32 %v2411_v50, %v3502_v15  ;;  %v1249_v48 = vpop.f32.mrb[87].mxu1  ;;  %2485 = vmatmul.mubr.bf16.gmra.mrb[80].mxu0 %v1382_v37  ;;  %v1347_v45 = vmax.f32 %v1255_v40, 0.0  ;;  %v2657_v50 = vld [vmem:[%s3318_s10 + $0x30] sm:$0xff] }
 0x30b   : > { %v1250_v18 = vadd.f32 %v3502_v15, %v1249_v48  ;;  %v1345_v12 = vmax.f32 %v1247_v44, 0.0 }
 0x30c   : > { %v1348_v49 = vmax.f32 %v1258_v51, 0.0 }
 0x30d   : > { %v1346_v16 = vmax.f32 %v1250_v18, 0.0 }
 0x30e   : > { %v1384_v42 = vpack.c.bf16 %v1348_v49, %v1347_v45  ;;  %v2658_v45 = vld [vmem:[%s3318_s10 + $0x20] sm:$0xff] }
 0x30f   : > { %v1383_v46 = vpack.c.bf16 %v1346_v16, %v1345_v12  ;;  %v2414_v9 = vpop.f32.mrb[88].mxu1 }
 0x310   : > { %v1271_v13 = vadd.f32 %v2414_v9, %v3502_v15  ;;  %v1262_v41 = vpop.f32.mrb[89].mxu1 }
 0x311   : > { %v1263_v47 = vadd.f32 %v3502_v15, %v1262_v41  ;;  %v2415_v52 = vpop.f32.mrb[90].mxu1  ;;  %2488 = vmatprep.mubr.bf16.mxu0 %v1383_v46 }
 0x312   : > { %v1274_v53 = vadd.f32 %v2415_v52, %v3502_v15  ;;  %v1265_v54 = vpop.f32.mrb[91].mxu1  ;;  %2489 = vmatmul.mubr.bf16.gmra.mrb[84].mxu0 %v1384_v42  ;;  %v1351_v56 = vmax.f32 %v1271_v13, 0.0  ;;  %v2659_v42 = vld [vmem:[%s3318_s10 + $0x38] sm:$0xff]  ;;  %v2660_v13 = vld [vmem:[%s3318_s10 + $0x28] sm:$0xff] }
 0x313   : > { %v1266_v55 = vadd.f32 %v3502_v15, %v1265_v54  ;;  %v1349_v58 = vmax.f32 %v1263_v47, 0.0 }
 0x314   : > { %v1352_v57 = vmax.f32 %v1274_v53, 0.0 }
 0x315   : > { %v1350_v59 = vmax.f32 %v1266_v55, 0.0 }
 0x316   : > { %v1386_v60 = vpack.c.bf16 %v1352_v57, %v1351_v56 }
 0x317   : > { %v1385_v61 = vpack.c.bf16 %v1350_v59, %v1349_v58  ;;  %v2418_v62 = vpop.f32.mrb[92].mxu1  ;;  %v2661_v58 = vld [vmem:[%s3318_s10 + $0x50] sm:$0xff] }
 0x318   : > { %v1287_v63 = vadd.f32 %v2418_v62, %v3502_v15  ;;  %v1278_v0 = vpop.f32.mrb[93].mxu1  ;;  %v2662_v62 = vld [vmem:[%s3318_s10 + $0x40] sm:$0xff] }
 0x319   : > { %v1279_v1 = vadd.f32 %v3502_v15, %v1278_v0  ;;  %v2419_v2 = vpop.f32.mrb[94].mxu1  ;;  %2492 = vmatprep.mubr.bf16.mxu0 %v1385_v61 }
 0x31a   : > { %v1290_v3 = vadd.f32 %v2419_v2, %v3502_v15  ;;  %v1281_v4 = vpop.f32.mrb[95].mxu1  ;;  %2493 = vmatmul.mubr.bf16.gmra.mrb[88].mxu0 %v1386_v60  ;;  %v1355_v6 = vmax.f32 %v1287_v63, 0.0  ;;  %v2663_v2 = vld [vmem:[%s3318_s10 + $0x58] sm:$0xff] }
 0x31b   : > { %v1282_v5 = vadd.f32 %v3502_v15, %v1281_v4  ;;  %v1353_v8 = vmax.f32 %v1279_v1, 0.0 }
 0x31c   : > { %v1356_v7 = vmax.f32 %v1290_v3, 0.0 }
 0x31d   : > { %v1354_v10 = vmax.f32 %v1282_v5, 0.0  ;;  %v2664_v5 = vld [vmem:[%s3318_s10 + $0x48] sm:$0xff] }
 0x31e   : > { %v1388_v11 = vpack.c.bf16 %v1356_v7, %v1355_v6 }
 0x31f   : > { %v1387_v14 = vpack.c.bf16 %v1354_v10, %v1353_v8 }
 0x321   : > { %2496 = vmatprep.mubr.bf16.mxu0 %v1387_v14 }
 0x322   : > { %2497 = vmatmul.mubr.bf16.gmra.mrb[92].mxu0 %v1388_v11 }
 0x37d   : > { %v2438_v19 = vpop.f32.mrb[32].mxu0 }
 0x37e   : > { %v1503_v20 = vadd.f32 %v2438_v19, %v3568_v17  ;;  %v1494_v21 = vpop.f32.mrb[33].mxu0 }
 0x37f   : > { %v1495_v15 = vadd.f32 %v3568_v17, %v1494_v21  ;;  %v2439_v22 = vpop.f32.mrb[34].mxu0  ;;  %v2665_v21 = vld [vmem:[%s3318_s10 + $0x70] sm:$0xff] }
 0x380   : > { %v1751_v24 = vadd.f32 %v2653_v23, %v1503_v20  ;;  %v1506_v25 = vadd.f32 %v2439_v22, %v3568_v17  ;;  %v1497_v26 = vpop.f32.mrb[35].mxu0 }
 0x381   : > { %v1749_v28 = vadd.f32 %v2654_v27, %v1495_v15  ;;  %v1498_v29 = vadd.f32 %v3568_v17, %v1497_v26 }
 0x382   : > { %v1815_v30 = vmax.f32 %v1751_v24, 0.0  ;;  %v1752_v32 = vadd.f32 %v2655_v31, %v1506_v25  ;;  %v2666_v24 = vld [vmem:[%s3318_s10 + $0x60] sm:$0xff]  ;;  %v2668_v31 = vld [vmem:[%s3318_s10 + $0x68] sm:$0xff] }
 0x383   : > { %v1813_v33 = vmax.f32 %v1749_v28, 0.0  ;;  %v1750_v35 = vadd.f32 %v2656_v34, %v1498_v29  ;;  %v2667_v28 = vld [vmem:[%s3318_s10 + $0x78] sm:$0xff] }
 0x384   : > { %1879 = vst [vmem:[%s3580_s8 + $0x10] sm:$0xff] %v1815_v30  ;;  %v1816_v36 = vmax.f32 %v1752_v32, 0.0 }
 0x385   : > { %1877 = vst [vmem:[%s3580_s8] sm:$0xff] %v1813_v33  ;;  %v1814_v37 = vmax.f32 %v1750_v35, 0.0  ;;  %v2442_v38 = vpop.f32.mrb[36].mxu0 }
 0x386   : > { %1880 = vst [vmem:[%s3580_s8 + $0x18] sm:$0xff] %v1816_v36  ;;  %v1519_v39 = vadd.f32 %v2442_v38, %v3568_v17  ;;  %v1510_v40 = vpop.f32.mrb[37].mxu0 }
 0x387   : > { %1878 = vst [vmem:[%s3580_s8 + $0x8] sm:$0xff] %v1814_v37  ;;  %v1511_v43 = vadd.f32 %v3568_v17, %v1510_v40  ;;  %v2443_v44 = vpop.f32.mrb[38].mxu0  ;;  %v2669_v40 = vld [vmem:[%s3318_s10 + $0x90] sm:$0xff] }
 0x388   : > { %v1755_v51 = vadd.f32 %v2657_v50, %v1519_v39  ;;  %v1522_v48 = vadd.f32 %v2443_v44, %v3568_v17  ;;  %v1513_v18 = vpop.f32.mrb[39].mxu0 }
 0x389   : > { %v1753_v49 = vadd.f32 %v2658_v45, %v1511_v43  ;;  %v1514_v12 = vadd.f32 %v3568_v17, %v1513_v18 }
 0x38a   : > { %v1819_v16 = vmax.f32 %v1755_v51, 0.0  ;;  %v1756_v46 = vadd.f32 %v2659_v42, %v1522_v48  ;;  %v2670_v51 = vld [vmem:[%s3318_s10 + $0x80] sm:$0xff]  ;;  %v2672_v42 = vld [vmem:[%s3318_s10 + $0x88] sm:$0xff] }
 0x38b   : > { %v1817_v9 = vmax.f32 %v1753_v49, 0.0  ;;  %v1754_v41 = vadd.f32 %v2660_v13, %v1514_v12  ;;  %v2671_v49 = vld [vmem:[%s3318_s10 + $0x98] sm:$0xff] }
 0x38c   : > { %1883 = vst [vmem:[%s3580_s8 + $0x30] sm:$0xff] %v1819_v16  ;;  %v1820_v47 = vmax.f32 %v1756_v46, 0.0 }
 0x38d   : > { %1881 = vst [vmem:[%s3580_s8 + $0x20] sm:$0xff] %v1817_v9  ;;  %v1818_v52 = vmax.f32 %v1754_v41, 0.0  ;;  %v2446_v53 = vpop.f32.mrb[40].mxu0 }
 0x38e   : > { %1884 = vst [vmem:[%s3580_s8 + $0x38] sm:$0xff] %v1820_v47  ;;  %v1535_v54 = vadd.f32 %v2446_v53, %v3568_v17  ;;  %v1526_v55 = vpop.f32.mrb[41].mxu0 }
 0x38f   : > { %1882 = vst [vmem:[%s3580_s8 + $0x28] sm:$0xff] %v1818_v52  ;;  %v1527_v56 = vadd.f32 %v3568_v17, %v1526_v55  ;;  %v2447_v57 = vpop.f32.mrb[42].mxu0  ;;  %v2673_v55 = vld [vmem:[%s3318_s10 + $0xb0] sm:$0xff] }
 0x390   : > { %v1759_v59 = vadd.f32 %v2661_v58, %v1535_v54  ;;  %v1538_v60 = vadd.f32 %v2447_v57, %v3568_v17  ;;  %v1529_v61 = vpop.f32.mrb[43].mxu0 }
 0x391   : > { %v1757_v63 = vadd.f32 %v2662_v62, %v1527_v56  ;;  %v1530_v0 = vadd.f32 %v3568_v17, %v1529_v61 }
 0x392   : > { %v1823_v1 = vmax.f32 %v1759_v59, 0.0  ;;  %v1760_v3 = vadd.f32 %v2663_v2, %v1538_v60  ;;  %v2674_v59 = vld [vmem:[%s3318_s10 + $0xa0] sm:$0xff]  ;;  %v2676_v2 = vld [vmem:[%s3318_s10 + $0xa8] sm:$0xff] }
 0x393   : > { %v1821_v4 = vmax.f32 %v1757_v63, 0.0  ;;  %v1758_v6 = vadd.f32 %v2664_v5, %v1530_v0  ;;  %v2675_v63 = vld [vmem:[%s3318_s10 + $0xb8] sm:$0xff] }
 0x394   : > { %1887 = vst [vmem:[%s3580_s8 + $0x50] sm:$0xff] %v1823_v1  ;;  %v1824_v7 = vmax.f32 %v1760_v3, 0.0 }
 0x395   : > { %1885 = vst [vmem:[%s3580_s8 + $0x40] sm:$0xff] %v1821_v4  ;;  %v1822_v8 = vmax.f32 %v1758_v6, 0.0  ;;  %v2450_v10 = vpop.f32.mrb[44].mxu0 }
 0x396   : > { %1888 = vst [vmem:[%s3580_s8 + $0x58] sm:$0xff] %v1824_v7  ;;  %v1551_v11 = vadd.f32 %v2450_v10, %v3568_v17  ;;  %v1542_v14 = vpop.f32.mrb[45].mxu0 }
 0x397   : > { %1886 = vst [vmem:[%s3580_s8 + $0x48] sm:$0xff] %v1822_v8  ;;  %v1543_v19 = vadd.f32 %v3568_v17, %v1542_v14  ;;  %v2451_v20 = vpop.f32.mrb[46].mxu0  ;;  %v2677_v14 = vld [vmem:[%s3318_s10 + $0xd0] sm:$0xff] }
 0x398   : > { %v1763_v15 = vadd.f32 %v2665_v21, %v1551_v11  ;;  %v1554_v22 = vadd.f32 %v2451_v20, %v3568_v17  ;;  %v1545_v23 = vpop.f32.mrb[47].mxu0 }
 0x399   : > { %v1761_v25 = vadd.f32 %v2666_v24, %v1543_v19  ;;  %v1546_v26 = vadd.f32 %v3568_v17, %v1545_v23 }
 0x39a   : > { %v1827_v27 = vmax.f32 %v1763_v15, 0.0  ;;  %v1764_v29 = vadd.f32 %v2667_v28, %v1554_v22  ;;  %v2678_v15 = vld [vmem:[%s3318_s10 + $0xc0] sm:$0xff]  ;;  %v2680_v28 = vld [vmem:[%s3318_s10 + $0xc8] sm:$0xff] }
 0x39b   : > { %v1825_v30 = vmax.f32 %v1761_v25, 0.0  ;;  %v1762_v32 = vadd.f32 %v2668_v31, %v1546_v26  ;;  %v2679_v25 = vld [vmem:[%s3318_s10 + $0xd8] sm:$0xff] }
 0x39c   : > { %1891 = vst [vmem:[%s3580_s8 + $0x70] sm:$0xff] %v1827_v27  ;;  %v1828_v33 = vmax.f32 %v1764_v29, 0.0 }
 0x39d   : > { %1889 = vst [vmem:[%s3580_s8 + $0x60] sm:$0xff] %v1825_v30  ;;  %v1826_v34 = vmax.f32 %v1762_v32, 0.0  ;;  %v2454_v35 = vpop.f32.mrb[48].mxu0 }
 0x39e   : > { %1892 = vst [vmem:[%s3580_s8 + $0x78] sm:$0xff] %v1828_v33  ;;  %v1567_v36 = vadd.f32 %v2454_v35, %v3568_v17  ;;  %v1558_v37 = vpop.f32.mrb[49].mxu0 }
 0x39f   : > { %1890 = vst [vmem:[%s3580_s8 + $0x68] sm:$0xff] %v1826_v34  ;;  %v1559_v38 = vadd.f32 %v3568_v17, %v1558_v37  ;;  %v2455_v39 = vpop.f32.mrb[50].mxu0  ;;  %v2681_v37 = vld [vmem:[%s3318_s10 + $0xf0] sm:$0xff] }
 0x3a0   : > { %v1767_v43 = vadd.f32 %v2669_v40, %v1567_v36  ;;  %v1570_v44 = vadd.f32 %v2455_v39, %v3568_v17  ;;  %v1561_v50 = vpop.f32.mrb[51].mxu0 }
 0x3a1   : > { %v1765_v48 = vadd.f32 %v2670_v51, %v1559_v38  ;;  %v1562_v18 = vadd.f32 %v3568_v17, %v1561_v50 }
 0x3a2   : > { %v1831_v45 = vmax.f32 %v1767_v43, 0.0  ;;  %v1768_v12 = vadd.f32 %v2671_v49, %v1570_v44  ;;  %v2682_v43 = vld [vmem:[%s3318_s10 + $0xe0] sm:$0xff]  ;;  %v2684_v49 = vld [vmem:[%s3318_s10 + $0xe8] sm:$0xff] }
 0x3a3   : > { %v1829_v16 = vmax.f32 %v1765_v48, 0.0  ;;  %v1766_v46 = vadd.f32 %v2672_v42, %v1562_v18  ;;  %v2683_v48 = vld [vmem:[%s3318_s10 + $0xf8] sm:$0xff] }
 0x3a4   : > { %1895 = vst [vmem:[%s3580_s8 + $0x90] sm:$0xff] %v1831_v45  ;;  %v1832_v9 = vmax.f32 %v1768_v12, 0.0 }
 0x3a5   : > { %1893 = vst [vmem:[%s3580_s8 + $0x80] sm:$0xff] %v1829_v16  ;;  %v1830_v13 = vmax.f32 %v1766_v46, 0.0  ;;  %v2458_v41 = vpop.f32.mrb[52].mxu0 }
 0x3a6   : > { %1896 = vst [vmem:[%s3580_s8 + $0x98] sm:$0xff] %v1832_v9  ;;  %v1583_v47 = vadd.f32 %v2458_v41, %v3568_v17  ;;  %v1574_v52 = vpop.f32.mrb[53].mxu0 }
 0x3a7   : > { %1894 = vst [vmem:[%s3580_s8 + $0x88] sm:$0xff] %v1830_v13  ;;  %v1575_v53 = vadd.f32 %v3568_v17, %v1574_v52  ;;  %v2459_v54 = vpop.f32.mrb[54].mxu0  ;;  %v2685_v52 = vld [vmem:[%s3318_s10 + $0x110] sm:$0xff] }
 0x3a8   : > { %v1771_v56 = vadd.f32 %v2673_v55, %v1583_v47  ;;  %v1586_v57 = vadd.f32 %v2459_v54, %v3568_v17  ;;  %v1577_v58 = vpop.f32.mrb[55].mxu0 }
 0x3a9   : > { %v1769_v60 = vadd.f32 %v2674_v59, %v1575_v53  ;;  %v1578_v61 = vadd.f32 %v3568_v17, %v1577_v58 }
 0x3aa   : > { %v1835_v62 = vmax.f32 %v1771_v56, 0.0  ;;  %v1772_v0 = vadd.f32 %v2675_v63, %v1586_v57  ;;  %v2686_v56 = vld [vmem:[%s3318_s10 + $0x100] sm:$0xff]  ;;  %v2688_v63 = vld [vmem:[%s3318_s10 + $0x108] sm:$0xff] }
 0x3ab   : > { %v1833_v1 = vmax.f32 %v1769_v60, 0.0  ;;  %v1770_v3 = vadd.f32 %v2676_v2, %v1578_v61  ;;  %v2687_v60 = vld [vmem:[%s3318_s10 + $0x118] sm:$0xff] }
 0x3ac   : > { %1899 = vst [vmem:[%s3580_s8 + $0xb0] sm:$0xff] %v1835_v62  ;;  %v1836_v4 = vmax.f32 %v1772_v0, 0.0 }
 0x3ad   : > { %1897 = vst [vmem:[%s3580_s8 + $0xa0] sm:$0xff] %v1833_v1  ;;  %v1834_v5 = vmax.f32 %v1770_v3, 0.0  ;;  %v2462_v6 = vpop.f32.mrb[56].mxu0 }
 0x3ae   : > { %1900 = vst [vmem:[%s3580_s8 + $0xb8] sm:$0xff] %v1836_v4  ;;  %v1599_v7 = vadd.f32 %v2462_v6, %v3568_v17  ;;  %v1590_v8 = vpop.f32.mrb[57].mxu0 }
 0x3af   : > { %1898 = vst [vmem:[%s3580_s8 + $0xa8] sm:$0xff] %v1834_v5  ;;  %v1591_v10 = vadd.f32 %v3568_v17, %v1590_v8  ;;  %v2463_v11 = vpop.f32.mrb[58].mxu0  ;;  %v2689_v8 = vld [vmem:[%s3318_s10 + $0x130] sm:$0xff] }
 0x3b0   : > { %v1775_v19 = vadd.f32 %v2677_v14, %v1599_v7  ;;  %v1602_v20 = vadd.f32 %v2463_v11, %v3568_v17  ;;  %v1593_v21 = vpop.f32.mrb[59].mxu0 }
 0x3b1   : > { %v1773_v22 = vadd.f32 %v2678_v15, %v1591_v10  ;;  %v1594_v23 = vadd.f32 %v3568_v17, %v1593_v21 }
 0x3b2   : > { %v1839_v24 = vmax.f32 %v1775_v19, 0.0  ;;  %v1776_v26 = vadd.f32 %v2679_v25, %v1602_v20  ;;  %v2690_v19 = vld [vmem:[%s3318_s10 + $0x120] sm:$0xff]  ;;  %v2692_v25 = vld [vmem:[%s3318_s10 + $0x128] sm:$0xff] }
 0x3b3   : > { %v1837_v27 = vmax.f32 %v1773_v22, 0.0  ;;  %v1774_v29 = vadd.f32 %v2680_v28, %v1594_v23  ;;  %v2691_v22 = vld [vmem:[%s3318_s10 + $0x138] sm:$0xff] }
 0x3b4   : > { %1903 = vst [vmem:[%s3580_s8 + $0xd0] sm:$0xff] %v1839_v24  ;;  %v1840_v30 = vmax.f32 %v1776_v26, 0.0 }
 0x3b5   : > { %1901 = vst [vmem:[%s3580_s8 + $0xc0] sm:$0xff] %v1837_v27  ;;  %v1838_v31 = vmax.f32 %v1774_v29, 0.0  ;;  %v2466_v32 = vpop.f32.mrb[60].mxu0 }
 0x3b6   : > { %1904 = vst [vmem:[%s3580_s8 + $0xd8] sm:$0xff] %v1840_v30  ;;  %v1615_v33 = vadd.f32 %v2466_v32, %v3568_v17  ;;  %v1606_v34 = vpop.f32.mrb[61].mxu0 }
 0x3b7   : > { %1902 = vst [vmem:[%s3580_s8 + $0xc8] sm:$0xff] %v1838_v31  ;;  %v1607_v35 = vadd.f32 %v3568_v17, %v1606_v34  ;;  %v2467_v36 = vpop.f32.mrb[62].mxu0  ;;  %v2693_v34 = vld [vmem:[%s3318_s10 + $0x150] sm:$0xff] }
 0x3b8   : > { %v1779_v38 = vadd.f32 %v2681_v37, %v1615_v33  ;;  %v1618_v39 = vadd.f32 %v2467_v36, %v3568_v17  ;;  %v1609_v40 = vpop.f32.mrb[63].mxu0 }
 0x3b9   : > { %v1777_v44 = vadd.f32 %v2682_v43, %v1607_v35  ;;  %v1610_v50 = vadd.f32 %v3568_v17, %v1609_v40 }
 0x3ba   : > { %v1843_v51 = vmax.f32 %v1779_v38, 0.0  ;;  %v1780_v18 = vadd.f32 %v2683_v48, %v1618_v39  ;;  %v2694_v38 = vld [vmem:[%s3318_s10 + $0x140] sm:$0xff]  ;;  %v2696_v48 = vld [vmem:[%s3318_s10 + $0x148] sm:$0xff] }
 0x3bb   : > { %v1841_v45 = vmax.f32 %v1777_v44, 0.0  ;;  %v1778_v12 = vadd.f32 %v2684_v49, %v1610_v50  ;;  %v2695_v44 = vld [vmem:[%s3318_s10 + $0x158] sm:$0xff] }
 0x3bc   : > { %1907 = vst [vmem:[%s3580_s8 + $0xf0] sm:$0xff] %v1843_v51  ;;  %v1844_v16 = vmax.f32 %v1780_v18, 0.0 }
 0x3bd   : > { %1905 = vst [vmem:[%s3580_s8 + $0xe0] sm:$0xff] %v1841_v45  ;;  %v1842_v42 = vmax.f32 %v1778_v12, 0.0  ;;  %v2470_v46 = vpop.f32.mrb[64].mxu0 }
 0x3be   : > { %1908 = vst [vmem:[%s3580_s8 + $0xf8] sm:$0xff] %v1844_v16  ;;  %v1631_v9 = vadd.f32 %v2470_v46, %v3568_v17  ;;  %v1622_v13 = vpop.f32.mrb[65].mxu0 }
 0x3bf   : > { %1906 = vst [vmem:[%s3580_s8 + $0xe8] sm:$0xff] %v1842_v42  ;;  %v1623_v41 = vadd.f32 %v3568_v17, %v1622_v13  ;;  %v2471_v47 = vpop.f32.mrb[66].mxu0  ;;  %v2697_v13 = vld [vmem:[%s3318_s10 + $0x170] sm:$0xff] }
 0x3c0   : > { %v1783_v53 = vadd.f32 %v2685_v52, %v1631_v9  ;;  %v1634_v54 = vadd.f32 %v2471_v47, %v3568_v17  ;;  %v1625_v55 = vpop.f32.mrb[67].mxu0 }
 0x3c1   : > { %v1781_v57 = vadd.f32 %v2686_v56, %v1623_v41  ;;  %v1626_v58 = vadd.f32 %v3568_v17, %v1625_v55 }
 0x3c2   : > { %v1847_v59 = vmax.f32 %v1783_v53, 0.0  ;;  %v1784_v61 = vadd.f32 %v2687_v60, %v1634_v54  ;;  %v2698_v53 = vld [vmem:[%s3318_s10 + $0x160] sm:$0xff]  ;;  %v2700_v60 = vld [vmem:[%s3318_s10 + $0x168] sm:$0xff] }
 0x3c3   : > { %v1845_v62 = vmax.f32 %v1781_v57, 0.0  ;;  %v1782_v0 = vadd.f32 %v2688_v63, %v1626_v58  ;;  %v2699_v57 = vld [vmem:[%s3318_s10 + $0x178] sm:$0xff] }
 0x3c4   : > { %1911 = vst [vmem:[%s3580_s8 + $0x110] sm:$0xff] %v1847_v59  ;;  %v1848_v1 = vmax.f32 %v1784_v61, 0.0 }
 0x3c5   : > { %1909 = vst [vmem:[%s3580_s8 + $0x100] sm:$0xff] %v1845_v62  ;;  %v1846_v2 = vmax.f32 %v1782_v0, 0.0  ;;  %v2474_v3 = vpop.f32.mrb[68].mxu0 }
 0x3c6   : > { %1912 = vst [vmem:[%s3580_s8 + $0x118] sm:$0xff] %v1848_v1  ;;  %v1647_v4 = vadd.f32 %v2474_v3, %v3568_v17  ;;  %v1638_v5 = vpop.f32.mrb[69].mxu0 }
 0x3c7   : > { %1910 = vst [vmem:[%s3580_s8 + $0x108] sm:$0xff] %v1846_v2  ;;  %v1639_v6 = vadd.f32 %v3568_v17, %v1638_v5  ;;  %v2475_v7 = vpop.f32.mrb[70].mxu0  ;;  %v2701_v5 = vld [vmem:[%s3318_s10 + $0x190] sm:$0xff] }
 0x3c8   : > { %v1787_v10 = vadd.f32 %v2689_v8, %v1647_v4  ;;  %v1650_v11 = vadd.f32 %v2475_v7, %v3568_v17  ;;  %v1641_v14 = vpop.f32.mrb[71].mxu0 }
 0x3c9   : > { %v1785_v20 = vadd.f32 %v2690_v19, %v1639_v6  ;;  %v1642_v21 = vadd.f32 %v3568_v17, %v1641_v14 }
 0x3ca   : > { %v1851_v15 = vmax.f32 %v1787_v10, 0.0  ;;  %v1788_v23 = vadd.f32 %v2691_v22, %v1650_v11  ;;  %v2702_v10 = vld [vmem:[%s3318_s10 + $0x180] sm:$0xff]  ;;  %v2704_v22 = vld [vmem:[%s3318_s10 + $0x188] sm:$0xff] }
 0x3cb   : > { %v1849_v24 = vmax.f32 %v1785_v20, 0.0  ;;  %v1786_v26 = vadd.f32 %v2692_v25, %v1642_v21  ;;  %v2703_v20 = vld [vmem:[%s3318_s10 + $0x198] sm:$0xff] }
 0x3cc   : > { %1915 = vst [vmem:[%s3580_s8 + $0x130] sm:$0xff] %v1851_v15  ;;  %v1852_v27 = vmax.f32 %v1788_v23, 0.0 }
 0x3cd   : > { %1913 = vst [vmem:[%s3580_s8 + $0x120] sm:$0xff] %v1849_v24  ;;  %v1850_v28 = vmax.f32 %v1786_v26, 0.0  ;;  %v2478_v29 = vpop.f32.mrb[72].mxu0 }
 0x3ce   : > { %1916 = vst [vmem:[%s3580_s8 + $0x138] sm:$0xff] %v1852_v27  ;;  %v1663_v30 = vadd.f32 %v2478_v29, %v3568_v17  ;;  %v1654_v31 = vpop.f32.mrb[73].mxu0 }
 0x3cf   : > { %1914 = vst [vmem:[%s3580_s8 + $0x128] sm:$0xff] %v1850_v28  ;;  %v1655_v32 = vadd.f32 %v3568_v17, %v1654_v31  ;;  %v2479_v33 = vpop.f32.mrb[74].mxu0  ;;  %v2705_v31 = vld [vmem:[%s3318_s10 + $0x1b0] sm:$0xff] }
 0x3d0   : > { %v1791_v35 = vadd.f32 %v2693_v34, %v1663_v30  ;;  %v1666_v36 = vadd.f32 %v2479_v33, %v3568_v17  ;;  %v1657_v37 = vpop.f32.mrb[75].mxu0 }
 0x3d1   : > { %v1789_v39 = vadd.f32 %v2694_v38, %v1655_v32  ;;  %v1658_v40 = vadd.f32 %v3568_v17, %v1657_v37 }
 0x3d2   : > { %v1855_v43 = vmax.f32 %v1791_v35, 0.0  ;;  %v1792_v50 = vadd.f32 %v2695_v44, %v1666_v36  ;;  %v2706_v35 = vld [vmem:[%s3318_s10 + $0x1a0] sm:$0xff]  ;;  %v2708_v44 = vld [vmem:[%s3318_s10 + $0x1a8] sm:$0xff] }
 0x3d3   : > { %v1853_v51 = vmax.f32 %v1789_v39, 0.0  ;;  %v1790_v18 = vadd.f32 %v2696_v48, %v1658_v40  ;;  %v2707_v39 = vld [vmem:[%s3318_s10 + $0x1b8] sm:$0xff] }
 0x3d4   : > { %1919 = vst [vmem:[%s3580_s8 + $0x150] sm:$0xff] %v1855_v43  ;;  %v1856_v45 = vmax.f32 %v1792_v50, 0.0 }
 0x3d5   : > { %1917 = vst [vmem:[%s3580_s8 + $0x140] sm:$0xff] %v1853_v51  ;;  %v1854_v49 = vmax.f32 %v1790_v18, 0.0  ;;  %v2482_v12 = vpop.f32.mrb[76].mxu0 }
 0x3d6   : > { %1920 = vst [vmem:[%s3580_s8 + $0x158] sm:$0xff] %v1856_v45  ;;  %v1679_v16 = vadd.f32 %v2482_v12, %v3568_v17  ;;  %v1670_v42 = vpop.f32.mrb[77].mxu0 }
 0x3d7   : > { %1918 = vst [vmem:[%s3580_s8 + $0x148] sm:$0xff] %v1854_v49  ;;  %v1671_v46 = vadd.f32 %v3568_v17, %v1670_v42  ;;  %v2483_v9 = vpop.f32.mrb[78].mxu0  ;;  %v2709_v42 = vld [vmem:[%s3318_s10 + $0x1d0] sm:$0xff] }
 0x3d8   : > { %v1795_v41 = vadd.f32 %v2697_v13, %v1679_v16  ;;  %v1682_v47 = vadd.f32 %v2483_v9, %v3568_v17  ;;  %v1673_v52 = vpop.f32.mrb[79].mxu0 }
 0x3d9   : > { %v1793_v54 = vadd.f32 %v2698_v53, %v1671_v46  ;;  %v1674_v55 = vadd.f32 %v3568_v17, %v1673_v52 }
 0x3da   : > { %v1859_v56 = vmax.f32 %v1795_v41, 0.0  ;;  %v1796_v58 = vadd.f32 %v2699_v57, %v1682_v47  ;;  %v2710_v41 = vld [vmem:[%s3318_s10 + $0x1c0] sm:$0xff]  ;;  %v2712_v57 = vld [vmem:[%s3318_s10 + $0x1c8] sm:$0xff] }
 0x3db   : > { %v1857_v59 = vmax.f32 %v1793_v54, 0.0  ;;  %v1794_v61 = vadd.f32 %v2700_v60, %v1674_v55  ;;  %v2711_v54 = vld [vmem:[%s3318_s10 + $0x1d8] sm:$0xff] }
 0x3dc   : > { %1923 = vst [vmem:[%s3580_s8 + $0x170] sm:$0xff] %v1859_v56  ;;  %v1860_v62 = vmax.f32 %v1796_v58, 0.0 }
 0x3dd   : > { %1921 = vst [vmem:[%s3580_s8 + $0x160] sm:$0xff] %v1857_v59  ;;  %v1858_v63 = vmax.f32 %v1794_v61, 0.0  ;;  %v2486_v0 = vpop.f32.mrb[80].mxu0 }
 0x3de   : > { %1924 = vst [vmem:[%s3580_s8 + $0x178] sm:$0xff] %v1860_v62  ;;  %v1695_v1 = vadd.f32 %v2486_v0, %v3568_v17  ;;  %v1686_v2 = vpop.f32.mrb[81].mxu0 }
 0x3df   : > { %1922 = vst [vmem:[%s3580_s8 + $0x168] sm:$0xff] %v1858_v63  ;;  %v1687_v3 = vadd.f32 %v3568_v17, %v1686_v2  ;;  %v2487_v4 = vpop.f32.mrb[82].mxu0  ;;  %v2713_v2 = vld [vmem:[%s3318_s10 + $0x1f0] sm:$0xff] }
 0x3e0   : > { %v1799_v6 = vadd.f32 %v2701_v5, %v1695_v1  ;;  %v1698_v7 = vadd.f32 %v2487_v4, %v3568_v17  ;;  %v1689_v8 = vpop.f32.mrb[83].mxu0 }
 0x3e1   : > { %v1797_v11 = vadd.f32 %v2702_v10, %v1687_v3  ;;  %v1690_v14 = vadd.f32 %v3568_v17, %v1689_v8 }
 0x3e2   : > { %v1863_v19 = vmax.f32 %v1799_v6, 0.0  ;;  %v1800_v21 = vadd.f32 %v2703_v20, %v1698_v7  ;;  %v2714_v6 = vld [vmem:[%s3318_s10 + $0x1e0] sm:$0xff]  ;;  %v2716_v20 = vld [vmem:[%s3318_s10 + $0x1e8] sm:$0xff] }
 0x3e3   : > { %v1861_v15 = vmax.f32 %v1797_v11, 0.0  ;;  %v1798_v23 = vadd.f32 %v2704_v22, %v1690_v14  ;;  %v2715_v11 = vld [vmem:[%s3318_s10 + $0x1f8] sm:$0xff] }
 0x3e4   : > { %1927 = vst [vmem:[%s3580_s8 + $0x190] sm:$0xff] %v1863_v19  ;;  %v1864_v24 = vmax.f32 %v1800_v21, 0.0 }
 0x3e5   : > { %1925 = vst [vmem:[%s3580_s8 + $0x180] sm:$0xff] %v1861_v15  ;;  %v1862_v25 = vmax.f32 %v1798_v23, 0.0  ;;  %v2490_v26 = vpop.f32.mrb[84].mxu0 }
 0x3e6   : > { %1928 = vst [vmem:[%s3580_s8 + $0x198] sm:$0xff] %v1864_v24  ;;  %v1711_v27 = vadd.f32 %v2490_v26, %v3568_v17  ;;  %v1702_v28 = vpop.f32.mrb[85].mxu0 }
 0x3e7   : > { %1926 = vst [vmem:[%s3580_s8 + $0x188] sm:$0xff] %v1862_v25  ;;  %v1703_v29 = vadd.f32 %v3568_v17, %v1702_v28  ;;  %v2491_v30 = vpop.f32.mrb[86].mxu0 }
 0x3e8   : > { %v1803_v32 = vadd.f32 %v2705_v31, %v1711_v27  ;;  %v1714_v33 = vadd.f32 %v2491_v30, %v3568_v17  ;;  %v1705_v34 = vpop.f32.mrb[87].mxu0 }
 0x3e9   : > { %v1801_v36 = vadd.f32 %v2706_v35, %v1703_v29  ;;  %v1706_v37 = vadd.f32 %v3568_v17, %v1705_v34 }
 0x3ea   : > { %v1867_v38 = vmax.f32 %v1803_v32, 0.0  ;;  %v1804_v40 = vadd.f32 %v2707_v39, %v1714_v33 }
 0x3eb   : > { %v1865_v43 = vmax.f32 %v1801_v36, 0.0  ;;  %v1802_v50 = vadd.f32 %v2708_v44, %v1706_v37 }
 0x3ec   : > { %1931 = vst [vmem:[%s3580_s8 + $0x1b0] sm:$0xff] %v1867_v38  ;;  %v1868_v51 = vmax.f32 %v1804_v40, 0.0 }
 0x3ed   : > { %1929 = vst [vmem:[%s3580_s8 + $0x1a0] sm:$0xff] %v1865_v43  ;;  %v1866_v48 = vmax.f32 %v1802_v50, 0.0  ;;  %v2494_v18 = vpop.f32.mrb[88].mxu0 }
 0x3ee   : > { %1932 = vst [vmem:[%s3580_s8 + $0x1b8] sm:$0xff] %v1868_v51  ;;  %v1727_v45 = vadd.f32 %v2494_v18, %v3568_v17  ;;  %v1718_v49 = vpop.f32.mrb[89].mxu0 }
 0x3ef   : > { %1930 = vst [vmem:[%s3580_s8 + $0x1a8] sm:$0xff] %v1866_v48  ;;  %v1719_v12 = vadd.f32 %v3568_v17, %v1718_v49  ;;  %v2495_v16 = vpop.f32.mrb[90].mxu0 }
 0x3f0   : > { %v1807_v46 = vadd.f32 %v2709_v42, %v1727_v45  ;;  %v1730_v9 = vadd.f32 %v2495_v16, %v3568_v17  ;;  %v1721_v13 = vpop.f32.mrb[91].mxu0 }
 0x3f1   : > { %v1805_v47 = vadd.f32 %v2710_v41, %v1719_v12  ;;  %v1722_v52 = vadd.f32 %v3568_v17, %v1721_v13 }
 0x3f2   : > { %v1871_v53 = vmax.f32 %v1807_v46, 0.0  ;;  %v1808_v55 = vadd.f32 %v2711_v54, %v1730_v9 }
 0x3f3   : > { %v1869_v56 = vmax.f32 %v1805_v47, 0.0  ;;  %v1806_v58 = vadd.f32 %v2712_v57, %v1722_v52 }
 0x3f4   : > { %1935 = vst [vmem:[%s3580_s8 + $0x1d0] sm:$0xff] %v1871_v53  ;;  %v1872_v59 = vmax.f32 %v1808_v55, 0.0 }
 0x3f5   : > { %1933 = vst [vmem:[%s3580_s8 + $0x1c0] sm:$0xff] %v1869_v56  ;;  %v1870_v60 = vmax.f32 %v1806_v58, 0.0  ;;  %v2498_v61 = vpop.f32.mrb[92].mxu0 }
 0x3f6   : > { %1936 = vst [vmem:[%s3580_s8 + $0x1d8] sm:$0xff] %v1872_v59  ;;  %v1743_v62 = vadd.f32 %v2498_v61, %v3568_v17  ;;  %v1734_v63 = vpop.f32.mrb[93].mxu0 }
 0x3f7   : > { %1934 = vst [vmem:[%s3580_s8 + $0x1c8] sm:$0xff] %v1870_v60  ;;  %v1735_v0 = vadd.f32 %v3568_v17, %v1734_v63  ;;  %v2499_v1 = vpop.f32.mrb[94].mxu0 }
 0x3f8   : > { %v1811_v3 = vadd.f32 %v2713_v2, %v1743_v62  ;;  %v1746_v4 = vadd.f32 %v2499_v1, %v3568_v17  ;;  %v1737_v5 = vpop.f32.mrb[95].mxu0 }
 0x3f9   : > { %v1809_v7 = vadd.f32 %v2714_v6, %v1735_v0  ;;  %v1738_v8 = vadd.f32 %v3568_v17, %v1737_v5 }
 0x3fa   : > { %v1875_v10 = vmax.f32 %v1811_v3, 0.0  ;;  %v1812_v14 = vadd.f32 %v2715_v11, %v1746_v4 }
 0x3fb   : > { %v1873_v19 = vmax.f32 %v1809_v7, 0.0  ;;  %v1810_v21 = vadd.f32 %v2716_v20, %v1738_v8 }
 0x3fc   : > { %1939 = vst [vmem:[%s3580_s8 + $0x1f0] sm:$0xff] %v1875_v10  ;;  %v1876_v15 = vmax.f32 %v1812_v14, 0.0 }
 0x3fd   : > { %1937 = vst [vmem:[%s3580_s8 + $0x1e0] sm:$0xff] %v1873_v19  ;;  %v1874_v17 = vmax.f32 %v1810_v21, 0.0 }
 0x3fe   : > { %1940 = vst [vmem:[%s3580_s8 + $0x1f8] sm:$0xff] %v1876_v15 }
 0x3ff   : > { %1938 = vst [vmem:[%s3580_s8 + $0x1e8] sm:$0xff] %v1874_v17 }
 0x400   : > { %2928 = shalt.err (!%p2925_p7)
}
 0x401   : > { %s2929_s14 = scalar_lea.hbm %s3768_s21, 8192  ;;  %s2933_s8 = scalar_lea.hbm %s3823_s7, 65536 }
 0x402   : > { %p2930_p9 = scmp.ne.s32.totalorder %s3768_s21, %s2929_s14  ;;  %p2934_p0 = scmp.lt.u32.totalorder %s3768_s21, %s3823_s7 }
 0x403   : > { %p2935_p4 = scmp.lt.u32.totalorder %s2933_s8, %s2929_s14  ;;  %p2937_p5 = scmp.lt.u32.totalorder %s2929_s14, %s3768_s21 }
 0x404   : > { %p2931_p10 = pnand %p2930_p9, %p3843_p8 }
 0x405   : > { %p2936_p6 = por %p2935_p4, %p2934_p0 }
 0x406   : > { %p2932_p11 = pneg %p2931_p10 }
 0x407   : > { %p2938_p12 = por %p2937_p5, %p2936_p6 }
 0x409   : > { %p2939_p13 = pnand %p2938_p12, %p2932_p11 }
 0x40b   : > { %2942 = shalt.err (!%p2939_p13)
}
 0x40c   : > { %s3007_s19 = smov 128   ;;  %s3008_s16 = smov 8  }
 0x40d   : > { %2542 = dma.vmem_to_hbm [thread:$0]  (%p3843_p8), %s3770_s20, 8192, %s3768_s21, %s1942_s30, %s3007_s19, %s3007_s19, %s3008_s16  }
 0x40e PF: > { %p2584_p1 = scmp.ge.s32.totalorder %s2993_s27, 2  ;;  %s1970_s17 = sand.u32 1, %s2981_s24  }
 0x40f   : > { %p3844_p3 = scmp.ne.s32.totalorder %s3834_s15, 0  ;;  %s1971_s13 = scalar_lea.sflag [#allocation4], %s1970_s17 }
 0x411   : > { %p2568_p2 = pnand %p2584_p1, %p3844_p3 }
 0x413   : > { %2976 = dma.done.wait (!%p2568_p2), %s1971_s13, 8192  }
 0x414   : > { %2978 = vsyncadd (!%p2568_p2), %s1971_s13, 4294959104  ;;  %p23_p7 = scmp.ge.s32.totalorder %s3233_s11, 10   ;;  %s3845_s24 = smov %s2985_s25 }
 0x415   : > { %s3846_s25 = smov %s2989_s26  ;;  %s3847_s26 = smov %s3244_s23 }
 0x416   : > { %s3848_s27 = smov %s3233_s11  ;;  %25 = sbr.rel (!%p23_p7) target bundleno = 8 (0x8), region = 117 }
 0x41d   :  { %1976 = vsyncpa [#allocation3], 1 }
 0x41e   :  { %1978 = vsyncpa [#allocation3 + $0x1], 1 }
 0x41f   :  { %1979 = vsyncpa [#allocation6], 1 }
 0x420   :  { %1980 = vsyncpa [#allocation9], 1 }
 0x421   :  { %1981 = vsyncpa [#allocation12], 1 }
 0x422   :  { %1982 = vsyncpa [#allocation4], 1 }
 0x423   :  { %1984 = vsyncpa [#allocation4 + $0x1], 1 }

</bundles_post_ra>
